<compile_context>
chip_gen: v7x
topology: tpu7x:2x2x1
jax: 0.10.0
libtpu: 0.0.40
codegen_flags: <defaults>
</compile_context>

<pallas_src>
import functools

import jax
import jax.numpy as jnp
from jax import lax
from jax.experimental import pallas as pl
from jax.experimental.pallas import tpu as pltpu

LANES = 128  # lane width; output blocks and padded E are lane-dense


def _round_up(a, m):
    return (a + m - 1) // m * m


def classifier_kernel(ids_ref, w_ref, b_ref, emb_ref, out_ref, acc_ref, *, seq_len):
    """One grid step processes one batch tile of TB rows.

    ids_ref : (B_pad*S,) int32, SMEM (scalar prefetch) - flattened token ids
    w_ref   : (1, E_pad)  f32,  VMEM                   - fused (fc1@fc2) * (1/S), zero-padded
    b_ref   : (1, 1)      f32,  SMEM                   - fused bias scalar
    emb_ref : (V_pad, E_pad) f32, VMEM                 - whole embedding table (on-chip)
    out_ref : (TB, 128)   f32,  VMEM                   - lane-dense output block
    acc_ref : (TB, E_pad) f32,  VMEM scratch           - per-row pooled (summed) embeddings
    """
    t = pl.program_id(0)
    TB, E_pad = acc_ref.shape
    S = seq_len

    # ---- In-register embedding gather + sequence sum (no DMA, table already in VMEM) ----
    def gather_row(b, carry):
        row = jnp.zeros((1, E_pad), jnp.float32)
        for s in range(S):  # S is small & static -> unrolled at trace time
            tok = ids_ref[(t * TB + b) * S + s]          # scalar read from SMEM
            row = row + emb_ref[pl.ds(tok, 1), :]        # (1, E_pad) dynamic-slice load
        acc_ref[pl.ds(b, 1), :] = row
        return carry

    lax.fori_loop(0, TB, gather_row, 0, unroll=min(TB, 8))

    # ---- Fused mean + fc1 -> fc2 + sigmoid ----
    # w_ref already carries the 1/S mean scale, so this is just broadcast-mul + lane reduce.
    logits = jnp.sum(acc_ref[...] * w_ref[...], axis=-1, keepdims=True) + b_ref[0, 0]  # (TB, 1)
    probs = jax.nn.sigmoid(logits)                                                      # (TB, 1)

    # Lane-dense store (unmasked vst); wrapper keeps column 0.
    out_ref[...] = jnp.broadcast_to(probs, out_ref.shape)


def simple_classifier_forward(x, emb_table, w1, b1, w2, b2, *, batch_tile=128):
    """x: (B, S) int ids; emb_table: (V, E); w1: (E, H); b1: (1, H); w2: (H, 1); b2: (1, 1)."""
    B, S = x.shape
    V, E = emb_table.shape

    hi = jax.lax.Precision.HIGHEST
    # Exact algebraic fusion of fc1 -> fc2 (NO nonlinearity between them in the source module),
    # with the 1/S mean scale folded into the fused weight.
    w_fused = jnp.dot(w1, w2, precision=hi).reshape(1, E) * (1.0 / float(S))   # (1, E)
    b_fused = (jnp.dot(b1, w2, precision=hi) + b2).reshape(1, 1)               # (1, 1)

    # Lane-dense padding of the embedding axis; sublane-align the vocab axis.
    E_pad = _round_up(E, LANES)
    V_pad = _round_up(V, 8)
    emb_pad = jnp.zeros((V_pad, E_pad), jnp.float32).at[:V, :E].set(emb_table.astype(jnp.float32))
    w_pad = jnp.zeros((1, E_pad), jnp.float32).at[:, :E].set(w_fused.astype(jnp.float32))
    b_fused = b_fused.astype(jnp.float32)

    # VMEM-resident table path only (always true for this module's shapes).
    table_bytes = V_pad * E_pad * 4
    assert table_bytes <= (16 << 20), "embedding table too large for the VMEM-resident path"

    # Adaptive batch tile: big enough to amortize per-step overhead, no larger than the
    # (sublane-aligned) batch so small batches don't burn padded work.
    TB = min(_round_up(batch_tile, 8), _round_up(B, 8))
    B_pad = _round_up(B, TB)
    num_tiles = B_pad // TB

    # Flattened ids in SMEM (1-D avoids the [*,128] 2-D SMEM padding blow-up).
    # Clip matches jnp's clamped-gather semantics; padded rows use id 0 and are sliced away.
    ids_flat = (
        jnp.zeros((B_pad * S,), jnp.int32)
        .at[: B * S]
        .set(jnp.clip(x.astype(jnp.int32), 0, V - 1).reshape(-1))
    )

    # Scoped-VMEM budget sized to the actual working set, capped for v7x's 64 MiB VMEM.
    vmem_needed = 4 * (V_pad * E_pad + TB * E_pad + 2 * TB * LANES + 2 * E_pad + 16)
    vmem_limit = int(min(max(2 * vmem_needed + (1 << 20), 16 << 20), 64 << 20))

    kernel = functools.partial(classifier_kernel, seq_len=S)

    out_padded = pl.pallas_call(
        kernel,
        out_shape=jax.ShapeDtypeStruct((B_pad, LANES), jnp.float32),
        grid_spec=pltpu.PrefetchScalarGridSpec(
            num_scalar_prefetch=1,                                   # token ids -> SMEM
            grid=(num_tiles,),
            in_specs=[
                pl.BlockSpec(memory_space=pltpu.MemorySpace.VMEM),   # fused weight (1, E_pad)
                pl.BlockSpec(memory_space=pltpu.MemorySpace.SMEM),   # fused bias scalar
                pl.BlockSpec(memory_space=pltpu.MemorySpace.VMEM),   # whole embedding table
            ],
            out_specs=pl.BlockSpec((TB, LANES), lambda t, ids_ref: (t, 0)),
            scratch_shapes=[pltpu.VMEM((TB, E_pad), jnp.float32)],   # pooled accumulator
        ),
        compiler_params=pltpu.CompilerParams(
            dimension_semantics=("parallel",),                       # batch tiles independent
            vmem_limit_bytes=vmem_limit,
        ),
    )(ids_flat, w_pad, b_fused, emb_pad)

    return out_padded[:B, :1]                                        # (B, 1)


def reference_forward(x, emb_table, w1, b1, w2, b2):
    hi = jax.lax.Precision.HIGHEST
    embedded = emb_table[x]                                # (B, S, E)
    pooled = jnp.mean(embedded, axis=1)                    # (B, E)
    h = jnp.dot(pooled, w1, precision=hi) + b1             # (B, H)
    out = jnp.dot(h, w2, precision=hi) + b2                # (B, 1)
    return jax.nn.sigmoid(out)


if __name__ == "__main__":
    # Small, deterministic shapes consistent with the module.
    B, S = 2, 8
    vocab_size, embedding_dim, hidden_dim = 32, 16, 8

    key = jax.random.PRNGKey(0)
    k_x, k_emb, k_w1, k_b1, k_w2, k_b2 = jax.random.split(key, 6)

    x = jax.random.randint(k_x, (B, S), 0, vocab_size, dtype=jnp.int32)
    emb_table = jax.random.normal(k_emb, (vocab_size, embedding_dim), jnp.float32)
    w1 = jax.random.normal(k_w1, (embedding_dim, hidden_dim), jnp.float32) * 0.1
    b1 = jax.random.normal(k_b1, (1, hidden_dim), jnp.float32) * 0.1
    w2 = jax.random.normal(k_w2, (hidden_dim, 1), jnp.float32) * 0.1
    b2 = jax.random.normal(k_b2, (1, 1), jnp.float32) * 0.1

    out = simple_classifier_forward(x, emb_table, w1, b1, w2, b2)
    out = jax.block_until_ready(out)

    ref = reference_forward(x, emb_table, w1, b1, w2, b2)
    assert out.shape == (B, 1)
    assert jnp.allclose(out, ref, atol=1e-5, rtol=1e-5), float(jnp.max(jnp.abs(out - ref)))

    print("KERNEL_OK")
</pallas_src>

<mosaic_0001>
module attributes {stable_mosaic.version = 11 : i64} {
  func.func @classifier_kernel(%arg0: i32, %arg1: memref<64xi32, #tpu.memory_space<smem>>, %arg2: memref<1x128xf32, #tpu.memory_space<vmem>>, %arg3: memref<1x1xf32, #tpu.memory_space<smem>>, %arg4: memref<32x128xf32, #tpu.memory_space<vmem>>, %arg5: memref<8x128xf32, #tpu.memory_space<vmem>>, %arg6: memref<8x128xf32, #tpu.memory_space<vmem>>) attributes {dimension_semantics = [#tpu.dimension_semantics<parallel>], iteration_bounds = array<i64: 1>, scalar_prefetch = 1 : i64, scratch_operands = 1 : i64, tpu.core_type = #tpu.core_type<tc>, window_params = [{pipeline_mode = #tpu.pipeline_mode<synchronous>, transform_indices = @transform_0, window_bounds = array<i64: 1, 128>}, {transform_indices = @transform_1, window_bounds = array<i64: 1, 1>}, {pipeline_mode = #tpu.pipeline_mode<synchronous>, transform_indices = @transform_2, window_bounds = array<i64: 32, 128>}, {transform_indices = @transform_3, window_bounds = array<i64: 8, 128>}]} {
    %c0_i32 = arith.constant 0 : i32
    %cst = arith.constant 0.000000e+00 : f32
    %0 = vector.broadcast %cst : f32 to vector<1x128xf32>
    %c8_i32 = arith.constant 8 : i32
    %1 = arith.muli %arg0, %c8_i32 : i32
    %2 = arith.addi %1, %c0_i32 : i32
    %c8_i32_0 = arith.constant 8 : i32
    %3 = arith.muli %2, %c8_i32_0 : i32
    %c0_i32_1 = arith.constant 0 : i32
    %4 = arith.addi %3, %c0_i32_1 : i32
    %5 = arith.index_cast %4 : i32 to index
    %6 = memref.load %arg1[%5] : memref<64xi32, #tpu.memory_space<smem>>
    %7 = arith.index_cast %6 : i32 to index
    %c0 = arith.constant 0 : index
    %8 = vector.load %arg4[%7, %c0] : memref<32x128xf32, #tpu.memory_space<vmem>>, vector<1x128xf32>
    %9 = arith.addf %0, %8 : vector<1x128xf32>
    %c8_i32_2 = arith.constant 8 : i32
    %10 = arith.muli %arg0, %c8_i32_2 : i32
    %11 = arith.addi %10, %c0_i32 : i32
    %c8_i32_3 = arith.constant 8 : i32
    %12 = arith.muli %11, %c8_i32_3 : i32
    %c1_i32 = arith.constant 1 : i32
    %13 = arith.addi %12, %c1_i32 : i32
    %14 = arith.index_cast %13 : i32 to index
    %15 = memref.load %arg1[%14] : memref<64xi32, #tpu.memory_space<smem>>
    %16 = arith.index_cast %15 : i32 to index
    %c0_4 = arith.constant 0 : index
    %17 = vector.load %arg4[%16, %c0_4] : memref<32x128xf32, #tpu.memory_space<vmem>>, vector<1x128xf32>
    %18 = arith.addf %9, %17 : vector<1x128xf32>
    %c8_i32_5 = arith.constant 8 : i32
    %19 = arith.muli %arg0, %c8_i32_5 : i32
    %20 = arith.addi %19, %c0_i32 : i32
    %c8_i32_6 = arith.constant 8 : i32
    %21 = arith.muli %20, %c8_i32_6 : i32
    %c2_i32 = arith.constant 2 : i32
    %22 = arith.addi %21, %c2_i32 : i32
    %23 = arith.index_cast %22 : i32 to index
    %24 = memref.load %arg1[%23] : memref<64xi32, #tpu.memory_space<smem>>
    %25 = arith.index_cast %24 : i32 to index
    %c0_7 = arith.constant 0 : index
    %26 = vector.load %arg4[%25, %c0_7] : memref<32x128xf32, #tpu.memory_space<vmem>>, vector<1x128xf32>
    %27 = arith.addf %18, %26 : vector<1x128xf32>
    %c8_i32_8 = arith.constant 8 : i32
    %28 = arith.muli %arg0, %c8_i32_8 : i32
    %29 = arith.addi %28, %c0_i32 : i32
    %c8_i32_9 = arith.constant 8 : i32
    %30 = arith.muli %29, %c8_i32_9 : i32
    %c3_i32 = arith.constant 3 : i32
    %31 = arith.addi %30, %c3_i32 : i32
    %32 = arith.index_cast %31 : i32 to index
    %33 = memref.load %arg1[%32] : memref<64xi32, #tpu.memory_space<smem>>
    %34 = arith.index_cast %33 : i32 to index
    %c0_10 = arith.constant 0 : index
    %35 = vector.load %arg4[%34, %c0_10] : memref<32x128xf32, #tpu.memory_space<vmem>>, vector<1x128xf32>
    %36 = arith.addf %27, %35 : vector<1x128xf32>
    %c8_i32_11 = arith.constant 8 : i32
    %37 = arith.muli %arg0, %c8_i32_11 : i32
    %38 = arith.addi %37, %c0_i32 : i32
    %c8_i32_12 = arith.constant 8 : i32
    %39 = arith.muli %38, %c8_i32_12 : i32
    %c4_i32 = arith.constant 4 : i32
    %40 = arith.addi %39, %c4_i32 : i32
    %41 = arith.index_cast %40 : i32 to index
    %42 = memref.load %arg1[%41] : memref<64xi32, #tpu.memory_space<smem>>
    %43 = arith.index_cast %42 : i32 to index
    %c0_13 = arith.constant 0 : index
    %44 = vector.load %arg4[%43, %c0_13] : memref<32x128xf32, #tpu.memory_space<vmem>>, vector<1x128xf32>
    %45 = arith.addf %36, %44 : vector<1x128xf32>
    %c8_i32_14 = arith.constant 8 : i32
    %46 = arith.muli %arg0, %c8_i32_14 : i32
    %47 = arith.addi %46, %c0_i32 : i32
    %c8_i32_15 = arith.constant 8 : i32
    %48 = arith.muli %47, %c8_i32_15 : i32
    %c5_i32 = arith.constant 5 : i32
    %49 = arith.addi %48, %c5_i32 : i32
    %50 = arith.index_cast %49 : i32 to index
    %51 = memref.load %arg1[%50] : memref<64xi32, #tpu.memory_space<smem>>
    %52 = arith.index_cast %51 : i32 to index
    %c0_16 = arith.constant 0 : index
    %53 = vector.load %arg4[%52, %c0_16] : memref<32x128xf32, #tpu.memory_space<vmem>>, vector<1x128xf32>
    %54 = arith.addf %45, %53 : vector<1x128xf32>
    %c8_i32_17 = arith.constant 8 : i32
    %55 = arith.muli %arg0, %c8_i32_17 : i32
    %56 = arith.addi %55, %c0_i32 : i32
    %c8_i32_18 = arith.constant 8 : i32
    %57 = arith.muli %56, %c8_i32_18 : i32
    %c6_i32 = arith.constant 6 : i32
    %58 = arith.addi %57, %c6_i32 : i32
    %59 = arith.index_cast %58 : i32 to index
    %60 = memref.load %arg1[%59] : memref<64xi32, #tpu.memory_space<smem>>
    %61 = arith.index_cast %60 : i32 to index
    %c0_19 = arith.constant 0 : index
    %62 = vector.load %arg4[%61, %c0_19] : memref<32x128xf32, #tpu.memory_space<vmem>>, vector<1x128xf32>
    %63 = arith.addf %54, %62 : vector<1x128xf32>
    %c8_i32_20 = arith.constant 8 : i32
    %64 = arith.muli %arg0, %c8_i32_20 : i32
    %65 = arith.addi %64, %c0_i32 : i32
    %c8_i32_21 = arith.constant 8 : i32
    %66 = arith.muli %65, %c8_i32_21 : i32
    %c7_i32 = arith.constant 7 : i32
    %67 = arith.addi %66, %c7_i32 : i32
    %68 = arith.index_cast %67 : i32 to index
    %69 = memref.load %arg1[%68] : memref<64xi32, #tpu.memory_space<smem>>
    %70 = arith.index_cast %69 : i32 to index
    %c0_22 = arith.constant 0 : index
    %71 = vector.load %arg4[%70, %c0_22] : memref<32x128xf32, #tpu.memory_space<vmem>>, vector<1x128xf32>
    %72 = arith.addf %63, %71 : vector<1x128xf32>
    %73 = arith.index_cast %c0_i32 : i32 to index
    %c0_23 = arith.constant 0 : index
    %74 = vector.load %arg6[%73, %c0_23] : memref<8x128xf32, #tpu.memory_space<vmem>>, vector<1x128xf32>
    tpu.vector_store %arg6[%73, %c0_23], %72 {strides = array<i32>} : memref<8x128xf32, #tpu.memory_space<vmem>>, vector<1x128xf32>,
    %c1_i32_24 = arith.constant 1 : i32
    %cst_25 = arith.constant 0.000000e+00 : f32
    %75 = vector.broadcast %cst_25 : f32 to vector<1x128xf32>
    %c8_i32_26 = arith.constant 8 : i32
    %76 = arith.muli %arg0, %c8_i32_26 : i32
    %77 = arith.addi %76, %c1_i32_24 : i32
    %c8_i32_27 = arith.constant 8 : i32
    %78 = arith.muli %77, %c8_i32_27 : i32
    %c0_i32_28 = arith.constant 0 : i32
    %79 = arith.addi %78, %c0_i32_28 : i32
    %80 = arith.index_cast %79 : i32 to index
    %81 = memref.load %arg1[%80] : memref<64xi32, #tpu.memory_space<smem>>
    %82 = arith.index_cast %81 : i32 to index
    %c0_29 = arith.constant 0 : index
    %83 = vector.load %arg4[%82, %c0_29] : memref<32x128xf32, #tpu.memory_space<vmem>>, vector<1x128xf32>
    %84 = arith.addf %75, %83 : vector<1x128xf32>
    %c8_i32_30 = arith.constant 8 : i32
    %85 = arith.muli %arg0, %c8_i32_30 : i32
    %86 = arith.addi %85, %c1_i32_24 : i32
    %c8_i32_31 = arith.constant 8 : i32
    %87 = arith.muli %86, %c8_i32_31 : i32
    %c1_i32_32 = arith.constant 1 : i32
    %88 = arith.addi %87, %c1_i32_32 : i32
    %89 = arith.index_cast %88 : i32 to index
    %90 = memref.load %arg1[%89] : memref<64xi32, #tpu.memory_space<smem>>
    %91 = arith.index_cast %90 : i32 to index
    %c0_33 = arith.constant 0 : index
    %92 = vector.load %arg4[%91, %c0_33] : memref<32x128xf32, #tpu.memory_space<vmem>>, vector<1x128xf32>
    %93 = arith.addf %84, %92 : vector<1x128xf32>
    %c8_i32_34 = arith.constant 8 : i32
    %94 = arith.muli %arg0, %c8_i32_34 : i32
    %95 = arith.addi %94, %c1_i32_24 : i32
    %c8_i32_35 = arith.constant 8 : i32
    %96 = arith.muli %95, %c8_i32_35 : i32
    %c2_i32_36 = arith.constant 2 : i32
    %97 = arith.addi %96, %c2_i32_36 : i32
    %98 = arith.index_cast %97 : i32 to index
    %99 = memref.load %arg1[%98] : memref<64xi32, #tpu.memory_space<smem>>
    %100 = arith.index_cast %99 : i32 to index
    %c0_37 = arith.constant 0 : index
    %101 = vector.load %arg4[%100, %c0_37] : memref<32x128xf32, #tpu.memory_space<vmem>>, vector<1x128xf32>
    %102 = arith.addf %93, %101 : vector<1x128xf32>
    %c8_i32_38 = arith.constant 8 : i32
    %103 = arith.muli %arg0, %c8_i32_38 : i32
    %104 = arith.addi %103, %c1_i32_24 : i32
    %c8_i32_39 = arith.constant 8 : i32
    %105 = arith.muli %104, %c8_i32_39 : i32
    %c3_i32_40 = arith.constant 3 : i32
    %106 = arith.addi %105, %c3_i32_40 : i32
    %107 = arith.index_cast %106 : i32 to index
    %108 = memref.load %arg1[%107] : memref<64xi32, #tpu.memory_space<smem>>
    %109 = arith.index_cast %108 : i32 to index
    %c0_41 = arith.constant 0 : index
    %110 = vector.load %arg4[%109, %c0_41] : memref<32x128xf32, #tpu.memory_space<vmem>>, vector<1x128xf32>
    %111 = arith.addf %102, %110 : vector<1x128xf32>
    %c8_i32_42 = arith.constant 8 : i32
    %112 = arith.muli %arg0, %c8_i32_42 : i32
    %113 = arith.addi %112, %c1_i32_24 : i32
    %c8_i32_43 = arith.constant 8 : i32
    %114 = arith.muli %113, %c8_i32_43 : i32
    %c4_i32_44 = arith.constant 4 : i32
    %115 = arith.addi %114, %c4_i32_44 : i32
    %116 = arith.index_cast %115 : i32 to index
    %117 = memref.load %arg1[%116] : memref<64xi32, #tpu.memory_space<smem>>
    %118 = arith.index_cast %117 : i32 to index
    %c0_45 = arith.constant 0 : index
    %119 = vector.load %arg4[%118, %c0_45] : memref<32x128xf32, #tpu.memory_space<vmem>>, vector<1x128xf32>
    %120 = arith.addf %111, %119 : vector<1x128xf32>
    %c8_i32_46 = arith.constant 8 : i32
    %121 = arith.muli %arg0, %c8_i32_46 : i32
    %122 = arith.addi %121, %c1_i32_24 : i32
    %c8_i32_47 = arith.constant 8 : i32
    %123 = arith.muli %122, %c8_i32_47 : i32
    %c5_i32_48 = arith.constant 5 : i32
    %124 = arith.addi %123, %c5_i32_48 : i32
    %125 = arith.index_cast %124 : i32 to index
    %126 = memref.load %arg1[%125] : memref<64xi32, #tpu.memory_space<smem>>
    %127 = arith.index_cast %126 : i32 to index
    %c0_49 = arith.constant 0 : index
    %128 = vector.load %arg4[%127, %c0_49] : memref<32x128xf32, #tpu.memory_space<vmem>>, vector<1x128xf32>
    %129 = arith.addf %120, %128 : vector<1x128xf32>
    %c8_i32_50 = arith.constant 8 : i32
    %130 = arith.muli %arg0, %c8_i32_50 : i32
    %131 = arith.addi %130, %c1_i32_24 : i32
    %c8_i32_51 = arith.constant 8 : i32
    %132 = arith.muli %131, %c8_i32_51 : i32
    %c6_i32_52 = arith.constant 6 : i32
    %133 = arith.addi %132, %c6_i32_52 : i32
    %134 = arith.index_cast %133 : i32 to index
    %135 = memref.load %arg1[%134] : memref<64xi32, #tpu.memory_space<smem>>
    %136 = arith.index_cast %135 : i32 to index
    %c0_53 = arith.constant 0 : index
    %137 = vector.load %arg4[%136, %c0_53] : memref<32x128xf32, #tpu.memory_space<vmem>>, vector<1x128xf32>
    %138 = arith.addf %129, %137 : vector<1x128xf32>
    %c8_i32_54 = arith.constant 8 : i32
    %139 = arith.muli %arg0, %c8_i32_54 : i32
    %140 = arith.addi %139, %c1_i32_24 : i32
    %c8_i32_55 = arith.constant 8 : i32
    %141 = arith.muli %140, %c8_i32_55 : i32
    %c7_i32_56 = arith.constant 7 : i32
    %142 = arith.addi %141, %c7_i32_56 : i32
    %143 = arith.index_cast %142 : i32 to index
    %144 = memref.load %arg1[%143] : memref<64xi32, #tpu.memory_space<smem>>
    %145 = arith.index_cast %144 : i32 to index
    %c0_57 = arith.constant 0 : index
    %146 = vector.load %arg4[%145, %c0_57] : memref<32x128xf32, #tpu.memory_space<vmem>>, vector<1x128xf32>
    %147 = arith.addf %138, %146 : vector<1x128xf32>
    %148 = arith.index_cast %c1_i32_24 : i32 to index
    %c0_58 = arith.constant 0 : index
    %149 = vector.load %arg6[%148, %c0_58] : memref<8x128xf32, #tpu.memory_space<vmem>>, vector<1x128xf32>
    tpu.vector_store %arg6[%148, %c0_58], %147 {strides = array<i32>} : memref<8x128xf32, #tpu.memory_space<vmem>>, vector<1x128xf32>,
    %c2_i32_59 = arith.constant 2 : i32
    %cst_60 = arith.constant 0.000000e+00 : f32
    %150 = vector.broadcast %cst_60 : f32 to vector<1x128xf32>
    %c8_i32_61 = arith.constant 8 : i32
    %151 = arith.muli %arg0, %c8_i32_61 : i32
    %152 = arith.addi %151, %c2_i32_59 : i32
    %c8_i32_62 = arith.constant 8 : i32
    %153 = arith.muli %152, %c8_i32_62 : i32
    %c0_i32_63 = arith.constant 0 : i32
    %154 = arith.addi %153, %c0_i32_63 : i32
    %155 = arith.index_cast %154 : i32 to index
    %156 = memref.load %arg1[%155] : memref<64xi32, #tpu.memory_space<smem>>
    %157 = arith.index_cast %156 : i32 to index
    %c0_64 = arith.constant 0 : index
    %158 = vector.load %arg4[%157, %c0_64] : memref<32x128xf32, #tpu.memory_space<vmem>>, vector<1x128xf32>
    %159 = arith.addf %150, %158 : vector<1x128xf32>
    %c8_i32_65 = arith.constant 8 : i32
    %160 = arith.muli %arg0, %c8_i32_65 : i32
    %161 = arith.addi %160, %c2_i32_59 : i32
    %c8_i32_66 = arith.constant 8 : i32
    %162 = arith.muli %161, %c8_i32_66 : i32
    %c1_i32_67 = arith.constant 1 : i32
    %163 = arith.addi %162, %c1_i32_67 : i32
    %164 = arith.index_cast %163 : i32 to index
    %165 = memref.load %arg1[%164] : memref<64xi32, #tpu.memory_space<smem>>
    %166 = arith.index_cast %165 : i32 to index
    %c0_68 = arith.constant 0 : index
    %167 = vector.load %arg4[%166, %c0_68] : memref<32x128xf32, #tpu.memory_space<vmem>>, vector<1x128xf32>
    %168 = arith.addf %159, %167 : vector<1x128xf32>
    %c8_i32_69 = arith.constant 8 : i32
    %169 = arith.muli %arg0, %c8_i32_69 : i32
    %170 = arith.addi %169, %c2_i32_59 : i32
    %c8_i32_70 = arith.constant 8 : i32
    %171 = arith.muli %170, %c8_i32_70 : i32
    %c2_i32_71 = arith.constant 2 : i32
    %172 = arith.addi %171, %c2_i32_71 : i32
    %173 = arith.index_cast %172 : i32 to index
    %174 = memref.load %arg1[%173] : memref<64xi32, #tpu.memory_space<smem>>
    %175 = arith.index_cast %174 : i32 to index
    %c0_72 = arith.constant 0 : index
    %176 = vector.load %arg4[%175, %c0_72] : memref<32x128xf32, #tpu.memory_space<vmem>>, vector<1x128xf32>
    %177 = arith.addf %168, %176 : vector<1x128xf32>
    %c8_i32_73 = arith.constant 8 : i32
    %178 = arith.muli %arg0, %c8_i32_73 : i32
    %179 = arith.addi %178, %c2_i32_59 : i32
    %c8_i32_74 = arith.constant 8 : i32
    %180 = arith.muli %179, %c8_i32_74 : i32
    %c3_i32_75 = arith.constant 3 : i32
    %181 = arith.addi %180, %c3_i32_75 : i32
    %182 = arith.index_cast %181 : i32 to index
    %183 = memref.load %arg1[%182] : memref<64xi32, #tpu.memory_space<smem>>
    %184 = arith.index_cast %183 : i32 to index
    %c0_76 = arith.constant 0 : index
    %185 = vector.load %arg4[%184, %c0_76] : memref<32x128xf32, #tpu.memory_space<vmem>>, vector<1x128xf32>
    %186 = arith.addf %177, %185 : vector<1x128xf32>
    %c8_i32_77 = arith.constant 8 : i32
    %187 = arith.muli %arg0, %c8_i32_77 : i32
    %188 = arith.addi %187, %c2_i32_59 : i32
    %c8_i32_78 = arith.constant 8 : i32
    %189 = arith.muli %188, %c8_i32_78 : i32
    %c4_i32_79 = arith.constant 4 : i32
    %190 = arith.addi %189, %c4_i32_79 : i32
    %191 = arith.index_cast %190 : i32 to index
    %192 = memref.load %arg1[%191] : memref<64xi32, #tpu.memory_space<smem>>
    %193 = arith.index_cast %192 : i32 to index
    %c0_80 = arith.constant 0 : index
    %194 = vector.load %arg4[%193, %c0_80] : memref<32x128xf32, #tpu.memory_space<vmem>>, vector<1x128xf32>
    %195 = arith.addf %186, %194 : vector<1x128xf32>
    %c8_i32_81 = arith.constant 8 : i32
    %196 = arith.muli %arg0, %c8_i32_81 : i32
    %197 = arith.addi %196, %c2_i32_59 : i32
    %c8_i32_82 = arith.constant 8 : i32
    %198 = arith.muli %197, %c8_i32_82 : i32
    %c5_i32_83 = arith.constant 5 : i32
    %199 = arith.addi %198, %c5_i32_83 : i32
    %200 = arith.index_cast %199 : i32 to index
    %201 = memref.load %arg1[%200] : memref<64xi32, #tpu.memory_space<smem>>
    %202 = arith.index_cast %201 : i32 to index
    %c0_84 = arith.constant 0 : index
    %203 = vector.load %arg4[%202, %c0_84] : memref<32x128xf32, #tpu.memory_space<vmem>>, vector<1x128xf32>
    %204 = arith.addf %195, %203 : vector<1x128xf32>
    %c8_i32_85 = arith.constant 8 : i32
    %205 = arith.muli %arg0, %c8_i32_85 : i32
    %206 = arith.addi %205, %c2_i32_59 : i32
    %c8_i32_86 = arith.constant 8 : i32
    %207 = arith.muli %206, %c8_i32_86 : i32
    %c6_i32_87 = arith.constant 6 : i32
    %208 = arith.addi %207, %c6_i32_87 : i32
    %209 = arith.index_cast %208 : i32 to index
    %210 = memref.load %arg1[%209] : memref<64xi32, #tpu.memory_space<smem>>
    %211 = arith.index_cast %210 : i32 to index
    %c0_88 = arith.constant 0 : index
    %212 = vector.load %arg4[%211, %c0_88] : memref<32x128xf32, #tpu.memory_space<vmem>>, vector<1x128xf32>
    %213 = arith.addf %204, %212 : vector<1x128xf32>
    %c8_i32_89 = arith.constant 8 : i32
    %214 = arith.muli %arg0, %c8_i32_89 : i32
    %215 = arith.addi %214, %c2_i32_59 : i32
    %c8_i32_90 = arith.constant 8 : i32
    %216 = arith.muli %215, %c8_i32_90 : i32
    %c7_i32_91 = arith.constant 7 : i32
    %217 = arith.addi %216, %c7_i32_91 : i32
    %218 = arith.index_cast %217 : i32 to index
    %219 = memref.load %arg1[%218] : memref<64xi32, #tpu.memory_space<smem>>
    %220 = arith.index_cast %219 : i32 to index
    %c0_92 = arith.constant 0 : index
    %221 = vector.load %arg4[%220, %c0_92] : memref<32x128xf32, #tpu.memory_space<vmem>>, vector<1x128xf32>
    %222 = arith.addf %213, %221 : vector<1x128xf32>
    %223 = arith.index_cast %c2_i32_59 : i32 to index
    %c0_93 = arith.constant 0 : index
    %224 = vector.load %arg6[%223, %c0_93] : memref<8x128xf32, #tpu.memory_space<vmem>>, vector<1x128xf32>
    tpu.vector_store %arg6[%223, %c0_93], %222 {strides = array<i32>} : memref<8x128xf32, #tpu.memory_space<vmem>>, vector<1x128xf32>,
    %c3_i32_94 = arith.constant 3 : i32
    %cst_95 = arith.constant 0.000000e+00 : f32
    %225 = vector.broadcast %cst_95 : f32 to vector<1x128xf32>
    %c8_i32_96 = arith.constant 8 : i32
    %226 = arith.muli %arg0, %c8_i32_96 : i32
    %227 = arith.addi %226, %c3_i32_94 : i32
    %c8_i32_97 = arith.constant 8 : i32
    %228 = arith.muli %227, %c8_i32_97 : i32
    %c0_i32_98 = arith.constant 0 : i32
    %229 = arith.addi %228, %c0_i32_98 : i32
    %230 = arith.index_cast %229 : i32 to index
    %231 = memref.load %arg1[%230] : memref<64xi32, #tpu.memory_space<smem>>
    %232 = arith.index_cast %231 : i32 to index
    %c0_99 = arith.constant 0 : index
    %233 = vector.load %arg4[%232, %c0_99] : memref<32x128xf32, #tpu.memory_space<vmem>>, vector<1x128xf32>
    %234 = arith.addf %225, %233 : vector<1x128xf32>
    %c8_i32_100 = arith.constant 8 : i32
    %235 = arith.muli %arg0, %c8_i32_100 : i32
    %236 = arith.addi %235, %c3_i32_94 : i32
    %c8_i32_101 = arith.constant 8 : i32
    %237 = arith.muli %236, %c8_i32_101 : i32
    %c1_i32_102 = arith.constant 1 : i32
    %238 = arith.addi %237, %c1_i32_102 : i32
    %239 = arith.index_cast %238 : i32 to index
    %240 = memref.load %arg1[%239] : memref<64xi32, #tpu.memory_space<smem>>
    %241 = arith.index_cast %240 : i32 to index
    %c0_103 = arith.constant 0 : index
    %242 = vector.load %arg4[%241, %c0_103] : memref<32x128xf32, #tpu.memory_space<vmem>>, vector<1x128xf32>
    %243 = arith.addf %234, %242 : vector<1x128xf32>
    %c8_i32_104 = arith.constant 8 : i32
    %244 = arith.muli %arg0, %c8_i32_104 : i32
    %245 = arith.addi %244, %c3_i32_94 : i32
    %c8_i32_105 = arith.constant 8 : i32
    %246 = arith.muli %245, %c8_i32_105 : i32
    %c2_i32_106 = arith.constant 2 : i32
    %247 = arith.addi %246, %c2_i32_106 : i32
    %248 = arith.index_cast %247 : i32 to index
    %249 = memref.load %arg1[%248] : memref<64xi32, #tpu.memory_space<smem>>
    %250 = arith.index_cast %249 : i32 to index
    %c0_107 = arith.constant 0 : index
    %251 = vector.load %arg4[%250, %c0_107] : memref<32x128xf32, #tpu.memory_space<vmem>>, vector<1x128xf32>
    %252 = arith.addf %243, %251 : vector<1x128xf32>
    %c8_i32_108 = arith.constant 8 : i32
    %253 = arith.muli %arg0, %c8_i32_108 : i32
    %254 = arith.addi %253, %c3_i32_94 : i32
    %c8_i32_109 = arith.constant 8 : i32
    %255 = arith.muli %254, %c8_i32_109 : i32
    %c3_i32_110 = arith.constant 3 : i32
    %256 = arith.addi %255, %c3_i32_110 : i32
    %257 = arith.index_cast %256 : i32 to index
    %258 = memref.load %arg1[%257] : memref<64xi32, #tpu.memory_space<smem>>
    %259 = arith.index_cast %258 : i32 to index
    %c0_111 = arith.constant 0 : index
    %260 = vector.load %arg4[%259, %c0_111] : memref<32x128xf32, #tpu.memory_space<vmem>>, vector<1x128xf32>
    %261 = arith.addf %252, %260 : vector<1x128xf32>
    %c8_i32_112 = arith.constant 8 : i32
    %262 = arith.muli %arg0, %c8_i32_112 : i32
    %263 = arith.addi %262, %c3_i32_94 : i32
    %c8_i32_113 = arith.constant 8 : i32
    %264 = arith.muli %263, %c8_i32_113 : i32
    %c4_i32_114 = arith.constant 4 : i32
    %265 = arith.addi %264, %c4_i32_114 : i32
    %266 = arith.index_cast %265 : i32 to index
    %267 = memref.load %arg1[%266] : memref<64xi32, #tpu.memory_space<smem>>
    %268 = arith.index_cast %267 : i32 to index
    %c0_115 = arith.constant 0 : index
    %269 = vector.load %arg4[%268, %c0_115] : memref<32x128xf32, #tpu.memory_space<vmem>>, vector<1x128xf32>
    %270 = arith.addf %261, %269 : vector<1x128xf32>
    %c8_i32_116 = arith.constant 8 : i32
    %271 = arith.muli %arg0, %c8_i32_116 : i32
    %272 = arith.addi %271, %c3_i32_94 : i32
    %c8_i32_117 = arith.constant 8 : i32
    %273 = arith.muli %272, %c8_i32_117 : i32
    %c5_i32_118 = arith.constant 5 : i32
    %274 = arith.addi %273, %c5_i32_118 : i32
    %275 = arith.index_cast %274 : i32 to index
    %276 = memref.load %arg1[%275] : memref<64xi32, #tpu.memory_space<smem>>
    %277 = arith.index_cast %276 : i32 to index
    %c0_119 = arith.constant 0 : index
    %278 = vector.load %arg4[%277, %c0_119] : memref<32x128xf32, #tpu.memory_space<vmem>>, vector<1x128xf32>
    %279 = arith.addf %270, %278 : vector<1x128xf32>
    %c8_i32_120 = arith.constant 8 : i32
    %280 = arith.muli %arg0, %c8_i32_120 : i32
    %281 = arith.addi %280, %c3_i32_94 : i32
    %c8_i32_121 = arith.constant 8 : i32
    %282 = arith.muli %281, %c8_i32_121 : i32
    %c6_i32_122 = arith.constant 6 : i32
    %283 = arith.addi %282, %c6_i32_122 : i32
    %284 = arith.index_cast %283 : i32 to index
    %285 = memref.load %arg1[%284] : memref<64xi32, #tpu.memory_space<smem>>
    %286 = arith.index_cast %285 : i32 to index
    %c0_123 = arith.constant 0 : index
    %287 = vector.load %arg4[%286, %c0_123] : memref<32x128xf32, #tpu.memory_space<vmem>>, vector<1x128xf32>
    %288 = arith.addf %279, %287 : vector<1x128xf32>
    %c8_i32_124 = arith.constant 8 : i32
    %289 = arith.muli %arg0, %c8_i32_124 : i32
    %290 = arith.addi %289, %c3_i32_94 : i32
    %c8_i32_125 = arith.constant 8 : i32
    %291 = arith.muli %290, %c8_i32_125 : i32
    %c7_i32_126 = arith.constant 7 : i32
    %292 = arith.addi %291, %c7_i32_126 : i32
    %293 = arith.index_cast %292 : i32 to index
    %294 = memref.load %arg1[%293] : memref<64xi32, #tpu.memory_space<smem>>
    %295 = arith.index_cast %294 : i32 to index
    %c0_127 = arith.constant 0 : index
    %296 = vector.load %arg4[%295, %c0_127] : memref<32x128xf32, #tpu.memory_space<vmem>>, vector<1x128xf32>
    %297 = arith.addf %288, %296 : vector<1x128xf32>
    %298 = arith.index_cast %c3_i32_94 : i32 to index
    %c0_128 = arith.constant 0 : index
    %299 = vector.load %arg6[%298, %c0_128] : memref<8x128xf32, #tpu.memory_space<vmem>>, vector<1x128xf32>
    tpu.vector_store %arg6[%298, %c0_128], %297 {strides = array<i32>} : memref<8x128xf32, #tpu.memory_space<vmem>>, vector<1x128xf32>,
    %c4_i32_129 = arith.constant 4 : i32
    %cst_130 = arith.constant 0.000000e+00 : f32
    %300 = vector.broadcast %cst_130 : f32 to vector<1x128xf32>
    %c8_i32_131 = arith.constant 8 : i32
    %301 = arith.muli %arg0, %c8_i32_131 : i32
    %302 = arith.addi %301, %c4_i32_129 : i32
    %c8_i32_132 = arith.constant 8 : i32
    %303 = arith.muli %302, %c8_i32_132 : i32
    %c0_i32_133 = arith.constant 0 : i32
    %304 = arith.addi %303, %c0_i32_133 : i32
    %305 = arith.index_cast %304 : i32 to index
    %306 = memref.load %arg1[%305] : memref<64xi32, #tpu.memory_space<smem>>
    %307 = arith.index_cast %306 : i32 to index
    %c0_134 = arith.constant 0 : index
    %308 = vector.load %arg4[%307, %c0_134] : memref<32x128xf32, #tpu.memory_space<vmem>>, vector<1x128xf32>
    %309 = arith.addf %300, %308 : vector<1x128xf32>
    %c8_i32_135 = arith.constant 8 : i32
    %310 = arith.muli %arg0, %c8_i32_135 : i32
    %311 = arith.addi %310, %c4_i32_129 : i32
    %c8_i32_136 = arith.constant 8 : i32
    %312 = arith.muli %311, %c8_i32_136 : i32
    %c1_i32_137 = arith.constant 1 : i32
    %313 = arith.addi %312, %c1_i32_137 : i32
    %314 = arith.index_cast %313 : i32 to index
    %315 = memref.load %arg1[%314] : memref<64xi32, #tpu.memory_space<smem>>
    %316 = arith.index_cast %315 : i32 to index
    %c0_138 = arith.constant 0 : index
    %317 = vector.load %arg4[%316, %c0_138] : memref<32x128xf32, #tpu.memory_space<vmem>>, vector<1x128xf32>
    %318 = arith.addf %309, %317 : vector<1x128xf32>
    %c8_i32_139 = arith.constant 8 : i32
    %319 = arith.muli %arg0, %c8_i32_139 : i32
    %320 = arith.addi %319, %c4_i32_129 : i32
    %c8_i32_140 = arith.constant 8 : i32
    %321 = arith.muli %320, %c8_i32_140 : i32
    %c2_i32_141 = arith.constant 2 : i32
    %322 = arith.addi %321, %c2_i32_141 : i32
    %323 = arith.index_cast %322 : i32 to index
    %324 = memref.load %arg1[%323] : memref<64xi32, #tpu.memory_space<smem>>
    %325 = arith.index_cast %324 : i32 to index
    %c0_142 = arith.constant 0 : index
    %326 = vector.load %arg4[%325, %c0_142] : memref<32x128xf32, #tpu.memory_space<vmem>>, vector<1x128xf32>
    %327 = arith.addf %318, %326 : vector<1x128xf32>
    %c8_i32_143 = arith.constant 8 : i32
    %328 = arith.muli %arg0, %c8_i32_143 : i32
    %329 = arith.addi %328, %c4_i32_129 : i32
    %c8_i32_144 = arith.constant 8 : i32
    %330 = arith.muli %329, %c8_i32_144 : i32
    %c3_i32_145 = arith.constant 3 : i32
    %331 = arith.addi %330, %c3_i32_145 : i32
    %332 = arith.index_cast %331 : i32 to index
    %333 = memref.load %arg1[%332] : memref<64xi32, #tpu.memory_space<smem>>
    %334 = arith.index_cast %333 : i32 to index
    %c0_146 = arith.constant 0 : index
    %335 = vector.load %arg4[%334, %c0_146] : memref<32x128xf32, #tpu.memory_space<vmem>>, vector<1x128xf32>
    %336 = arith.addf %327, %335 : vector<1x128xf32>
    %c8_i32_147 = arith.constant 8 : i32
    %337 = arith.muli %arg0, %c8_i32_147 : i32
    %338 = arith.addi %337, %c4_i32_129 : i32
    %c8_i32_148 = arith.constant 8 : i32
    %339 = arith.muli %338, %c8_i32_148 : i32
    %c4_i32_149 = arith.constant 4 : i32
    %340 = arith.addi %339, %c4_i32_149 : i32
    %341 = arith.index_cast %340 : i32 to index
    %342 = memref.load %arg1[%341] : memref<64xi32, #tpu.memory_space<smem>>
    %343 = arith.index_cast %342 : i32 to index
    %c0_150 = arith.constant 0 : index
    %344 = vector.load %arg4[%343, %c0_150] : memref<32x128xf32, #tpu.memory_space<vmem>>, vector<1x128xf32>
    %345 = arith.addf %336, %344 : vector<1x128xf32>
    %c8_i32_151 = arith.constant 8 : i32
    %346 = arith.muli %arg0, %c8_i32_151 : i32
    %347 = arith.addi %346, %c4_i32_129 : i32
    %c8_i32_152 = arith.constant 8 : i32
    %348 = arith.muli %347, %c8_i32_152 : i32
    %c5_i32_153 = arith.constant 5 : i32
    %349 = arith.addi %348, %c5_i32_153 : i32
    %350 = arith.index_cast %349 : i32 to index
    %351 = memref.load %arg1[%350] : memref<64xi32, #tpu.memory_space<smem>>
    %352 = arith.index_cast %351 : i32 to index
    %c0_154 = arith.constant 0 : index
    %353 = vector.load %arg4[%352, %c0_154] : memref<32x128xf32, #tpu.memory_space<vmem>>, vector<1x128xf32>
    %354 = arith.addf %345, %353 : vector<1x128xf32>
    %c8_i32_155 = arith.constant 8 : i32
    %355 = arith.muli %arg0, %c8_i32_155 : i32
    %356 = arith.addi %355, %c4_i32_129 : i32
    %c8_i32_156 = arith.constant 8 : i32
    %357 = arith.muli %356, %c8_i32_156 : i32
    %c6_i32_157 = arith.constant 6 : i32
    %358 = arith.addi %357, %c6_i32_157 : i32
    %359 = arith.index_cast %358 : i32 to index
    %360 = memref.load %arg1[%359] : memref<64xi32, #tpu.memory_space<smem>>
    %361 = arith.index_cast %360 : i32 to index
    %c0_158 = arith.constant 0 : index
    %362 = vector.load %arg4[%361, %c0_158] : memref<32x128xf32, #tpu.memory_space<vmem>>, vector<1x128xf32>
    %363 = arith.addf %354, %362 : vector<1x128xf32>
    %c8_i32_159 = arith.constant 8 : i32
    %364 = arith.muli %arg0, %c8_i32_159 : i32
    %365 = arith.addi %364, %c4_i32_129 : i32
    %c8_i32_160 = arith.constant 8 : i32
    %366 = arith.muli %365, %c8_i32_160 : i32
    %c7_i32_161 = arith.constant 7 : i32
    %367 = arith.addi %366, %c7_i32_161 : i32
    %368 = arith.index_cast %367 : i32 to index
    %369 = memref.load %arg1[%368] : memref<64xi32, #tpu.memory_space<smem>>
    %370 = arith.index_cast %369 : i32 to index
    %c0_162 = arith.constant 0 : index
    %371 = vector.load %arg4[%370, %c0_162] : memref<32x128xf32, #tpu.memory_space<vmem>>, vector<1x128xf32>
    %372 = arith.addf %363, %371 : vector<1x128xf32>
    %373 = arith.index_cast %c4_i32_129 : i32 to index
    %c0_163 = arith.constant 0 : index
    %374 = vector.load %arg6[%373, %c0_163] : memref<8x128xf32, #tpu.memory_space<vmem>>, vector<1x128xf32>
    tpu.vector_store %arg6[%373, %c0_163], %372 {strides = array<i32>} : memref<8x128xf32, #tpu.memory_space<vmem>>, vector<1x128xf32>,
    %c5_i32_164 = arith.constant 5 : i32
    %cst_165 = arith.constant 0.000000e+00 : f32
    %375 = vector.broadcast %cst_165 : f32 to vector<1x128xf32>
    %c8_i32_166 = arith.constant 8 : i32
    %376 = arith.muli %arg0, %c8_i32_166 : i32
    %377 = arith.addi %376, %c5_i32_164 : i32
    %c8_i32_167 = arith.constant 8 : i32
    %378 = arith.muli %377, %c8_i32_167 : i32
    %c0_i32_168 = arith.constant 0 : i32
    %379 = arith.addi %378, %c0_i32_168 : i32
    %380 = arith.index_cast %379 : i32 to index
    %381 = memref.load %arg1[%380] : memref<64xi32, #tpu.memory_space<smem>>
    %382 = arith.index_cast %381 : i32 to index
    %c0_169 = arith.constant 0 : index
    %383 = vector.load %arg4[%382, %c0_169] : memref<32x128xf32, #tpu.memory_space<vmem>>, vector<1x128xf32>
    %384 = arith.addf %375, %383 : vector<1x128xf32>
    %c8_i32_170 = arith.constant 8 : i32
    %385 = arith.muli %arg0, %c8_i32_170 : i32
    %386 = arith.addi %385, %c5_i32_164 : i32
    %c8_i32_171 = arith.constant 8 : i32
    %387 = arith.muli %386, %c8_i32_171 : i32
    %c1_i32_172 = arith.constant 1 : i32
    %388 = arith.addi %387, %c1_i32_172 : i32
    %389 = arith.index_cast %388 : i32 to index
    %390 = memref.load %arg1[%389] : memref<64xi32, #tpu.memory_space<smem>>
    %391 = arith.index_cast %390 : i32 to index
    %c0_173 = arith.constant 0 : index
    %392 = vector.load %arg4[%391, %c0_173] : memref<32x128xf32, #tpu.memory_space<vmem>>, vector<1x128xf32>
    %393 = arith.addf %384, %392 : vector<1x128xf32>
    %c8_i32_174 = arith.constant 8 : i32
    %394 = arith.muli %arg0, %c8_i32_174 : i32
    %395 = arith.addi %394, %c5_i32_164 : i32
    %c8_i32_175 = arith.constant 8 : i32
    %396 = arith.muli %395, %c8_i32_175 : i32
    %c2_i32_176 = arith.constant 2 : i32
    %397 = arith.addi %396, %c2_i32_176 : i32
    %398 = arith.index_cast %397 : i32 to index
    %399 = memref.load %arg1[%398] : memref<64xi32, #tpu.memory_space<smem>>
    %400 = arith.index_cast %399 : i32 to index
    %c0_177 = arith.constant 0 : index
    %401 = vector.load %arg4[%400, %c0_177] : memref<32x128xf32, #tpu.memory_space<vmem>>, vector<1x128xf32>
    %402 = arith.addf %393, %401 : vector<1x128xf32>
    %c8_i32_178 = arith.constant 8 : i32
    %403 = arith.muli %arg0, %c8_i32_178 : i32
    %404 = arith.addi %403, %c5_i32_164 : i32
    %c8_i32_179 = arith.constant 8 : i32
    %405 = arith.muli %404, %c8_i32_179 : i32
    %c3_i32_180 = arith.constant 3 : i32
    %406 = arith.addi %405, %c3_i32_180 : i32
    %407 = arith.index_cast %406 : i32 to index
    %408 = memref.load %arg1[%407] : memref<64xi32, #tpu.memory_space<smem>>
    %409 = arith.index_cast %408 : i32 to index
    %c0_181 = arith.constant 0 : index
    %410 = vector.load %arg4[%409, %c0_181] : memref<32x128xf32, #tpu.memory_space<vmem>>, vector<1x128xf32>
    %411 = arith.addf %402, %410 : vector<1x128xf32>
    %c8_i32_182 = arith.constant 8 : i32
    %412 = arith.muli %arg0, %c8_i32_182 : i32
    %413 = arith.addi %412, %c5_i32_164 : i32
    %c8_i32_183 = arith.constant 8 : i32
    %414 = arith.muli %413, %c8_i32_183 : i32
    %c4_i32_184 = arith.constant 4 : i32
    %415 = arith.addi %414, %c4_i32_184 : i32
    %416 = arith.index_cast %415 : i32 to index
    %417 = memref.load %arg1[%416] : memref<64xi32, #tpu.memory_space<smem>>
    %418 = arith.index_cast %417 : i32 to index
    %c0_185 = arith.constant 0 : index
    %419 = vector.load %arg4[%418, %c0_185] : memref<32x128xf32, #tpu.memory_space<vmem>>, vector<1x128xf32>
    %420 = arith.addf %411, %419 : vector<1x128xf32>
    %c8_i32_186 = arith.constant 8 : i32
    %421 = arith.muli %arg0, %c8_i32_186 : i32
    %422 = arith.addi %421, %c5_i32_164 : i32
    %c8_i32_187 = arith.constant 8 : i32
    %423 = arith.muli %422, %c8_i32_187 : i32
    %c5_i32_188 = arith.constant 5 : i32
    %424 = arith.addi %423, %c5_i32_188 : i32
    %425 = arith.index_cast %424 : i32 to index
    %426 = memref.load %arg1[%425] : memref<64xi32, #tpu.memory_space<smem>>
    %427 = arith.index_cast %426 : i32 to index
    %c0_189 = arith.constant 0 : index
    %428 = vector.load %arg4[%427, %c0_189] : memref<32x128xf32, #tpu.memory_space<vmem>>, vector<1x128xf32>
    %429 = arith.addf %420, %428 : vector<1x128xf32>
    %c8_i32_190 = arith.constant 8 : i32
    %430 = arith.muli %arg0, %c8_i32_190 : i32
    %431 = arith.addi %430, %c5_i32_164 : i32
    %c8_i32_191 = arith.constant 8 : i32
    %432 = arith.muli %431, %c8_i32_191 : i32
    %c6_i32_192 = arith.constant 6 : i32
    %433 = arith.addi %432, %c6_i32_192 : i32
    %434 = arith.index_cast %433 : i32 to index
    %435 = memref.load %arg1[%434] : memref<64xi32, #tpu.memory_space<smem>>
    %436 = arith.index_cast %435 : i32 to index
    %c0_193 = arith.constant 0 : index
    %437 = vector.load %arg4[%436, %c0_193] : memref<32x128xf32, #tpu.memory_space<vmem>>, vector<1x128xf32>
    %438 = arith.addf %429, %437 : vector<1x128xf32>
    %c8_i32_194 = arith.constant 8 : i32
    %439 = arith.muli %arg0, %c8_i32_194 : i32
    %440 = arith.addi %439, %c5_i32_164 : i32
    %c8_i32_195 = arith.constant 8 : i32
    %441 = arith.muli %440, %c8_i32_195 : i32
    %c7_i32_196 = arith.constant 7 : i32
    %442 = arith.addi %441, %c7_i32_196 : i32
    %443 = arith.index_cast %442 : i32 to index
    %444 = memref.load %arg1[%443] : memref<64xi32, #tpu.memory_space<smem>>
    %445 = arith.index_cast %444 : i32 to index
    %c0_197 = arith.constant 0 : index
    %446 = vector.load %arg4[%445, %c0_197] : memref<32x128xf32, #tpu.memory_space<vmem>>, vector<1x128xf32>
    %447 = arith.addf %438, %446 : vector<1x128xf32>
    %448 = arith.index_cast %c5_i32_164 : i32 to index
    %c0_198 = arith.constant 0 : index
    %449 = vector.load %arg6[%448, %c0_198] : memref<8x128xf32, #tpu.memory_space<vmem>>, vector<1x128xf32>
    tpu.vector_store %arg6[%448, %c0_198], %447 {strides = array<i32>} : memref<8x128xf32, #tpu.memory_space<vmem>>, vector<1x128xf32>,
    %c6_i32_199 = arith.constant 6 : i32
    %cst_200 = arith.constant 0.000000e+00 : f32
    %450 = vector.broadcast %cst_200 : f32 to vector<1x128xf32>
    %c8_i32_201 = arith.constant 8 : i32
    %451 = arith.muli %arg0, %c8_i32_201 : i32
    %452 = arith.addi %451, %c6_i32_199 : i32
    %c8_i32_202 = arith.constant 8 : i32
    %453 = arith.muli %452, %c8_i32_202 : i32
    %c0_i32_203 = arith.constant 0 : i32
    %454 = arith.addi %453, %c0_i32_203 : i32
    %455 = arith.index_cast %454 : i32 to index
    %456 = memref.load %arg1[%455] : memref<64xi32, #tpu.memory_space<smem>>
    %457 = arith.index_cast %456 : i32 to index
    %c0_204 = arith.constant 0 : index
    %458 = vector.load %arg4[%457, %c0_204] : memref<32x128xf32, #tpu.memory_space<vmem>>, vector<1x128xf32>
    %459 = arith.addf %450, %458 : vector<1x128xf32>
    %c8_i32_205 = arith.constant 8 : i32
    %460 = arith.muli %arg0, %c8_i32_205 : i32
    %461 = arith.addi %460, %c6_i32_199 : i32
    %c8_i32_206 = arith.constant 8 : i32
    %462 = arith.muli %461, %c8_i32_206 : i32
    %c1_i32_207 = arith.constant 1 : i32
    %463 = arith.addi %462, %c1_i32_207 : i32
    %464 = arith.index_cast %463 : i32 to index
    %465 = memref.load %arg1[%464] : memref<64xi32, #tpu.memory_space<smem>>
    %466 = arith.index_cast %465 : i32 to index
    %c0_208 = arith.constant 0 : index
    %467 = vector.load %arg4[%466, %c0_208] : memref<32x128xf32, #tpu.memory_space<vmem>>, vector<1x128xf32>
    %468 = arith.addf %459, %467 : vector<1x128xf32>
    %c8_i32_209 = arith.constant 8 : i32
    %469 = arith.muli %arg0, %c8_i32_209 : i32
    %470 = arith.addi %469, %c6_i32_199 : i32
    %c8_i32_210 = arith.constant 8 : i32
    %471 = arith.muli %470, %c8_i32_210 : i32
    %c2_i32_211 = arith.constant 2 : i32
    %472 = arith.addi %471, %c2_i32_211 : i32
    %473 = arith.index_cast %472 : i32 to index
    %474 = memref.load %arg1[%473] : memref<64xi32, #tpu.memory_space<smem>>
    %475 = arith.index_cast %474 : i32 to index
    %c0_212 = arith.constant 0 : index
    %476 = vector.load %arg4[%475, %c0_212] : memref<32x128xf32, #tpu.memory_space<vmem>>, vector<1x128xf32>
    %477 = arith.addf %468, %476 : vector<1x128xf32>
    %c8_i32_213 = arith.constant 8 : i32
    %478 = arith.muli %arg0, %c8_i32_213 : i32
    %479 = arith.addi %478, %c6_i32_199 : i32
    %c8_i32_214 = arith.constant 8 : i32
    %480 = arith.muli %479, %c8_i32_214 : i32
    %c3_i32_215 = arith.constant 3 : i32
    %481 = arith.addi %480, %c3_i32_215 : i32
    %482 = arith.index_cast %481 : i32 to index
    %483 = memref.load %arg1[%482] : memref<64xi32, #tpu.memory_space<smem>>
    %484 = arith.index_cast %483 : i32 to index
    %c0_216 = arith.constant 0 : index
    %485 = vector.load %arg4[%484, %c0_216] : memref<32x128xf32, #tpu.memory_space<vmem>>, vector<1x128xf32>
    %486 = arith.addf %477, %485 : vector<1x128xf32>
    %c8_i32_217 = arith.constant 8 : i32
    %487 = arith.muli %arg0, %c8_i32_217 : i32
    %488 = arith.addi %487, %c6_i32_199 : i32
    %c8_i32_218 = arith.constant 8 : i32
    %489 = arith.muli %488, %c8_i32_218 : i32
    %c4_i32_219 = arith.constant 4 : i32
    %490 = arith.addi %489, %c4_i32_219 : i32
    %491 = arith.index_cast %490 : i32 to index
    %492 = memref.load %arg1[%491] : memref<64xi32, #tpu.memory_space<smem>>
    %493 = arith.index_cast %492 : i32 to index
    %c0_220 = arith.constant 0 : index
    %494 = vector.load %arg4[%493, %c0_220] : memref<32x128xf32, #tpu.memory_space<vmem>>, vector<1x128xf32>
    %495 = arith.addf %486, %494 : vector<1x128xf32>
    %c8_i32_221 = arith.constant 8 : i32
    %496 = arith.muli %arg0, %c8_i32_221 : i32
    %497 = arith.addi %496, %c6_i32_199 : i32
    %c8_i32_222 = arith.constant 8 : i32
    %498 = arith.muli %497, %c8_i32_222 : i32
    %c5_i32_223 = arith.constant 5 : i32
    %499 = arith.addi %498, %c5_i32_223 : i32
    %500 = arith.index_cast %499 : i32 to index
    %501 = memref.load %arg1[%500] : memref<64xi32, #tpu.memory_space<smem>>
    %502 = arith.index_cast %501 : i32 to index
    %c0_224 = arith.constant 0 : index
    %503 = vector.load %arg4[%502, %c0_224] : memref<32x128xf32, #tpu.memory_space<vmem>>, vector<1x128xf32>
    %504 = arith.addf %495, %503 : vector<1x128xf32>
    %c8_i32_225 = arith.constant 8 : i32
    %505 = arith.muli %arg0, %c8_i32_225 : i32
    %506 = arith.addi %505, %c6_i32_199 : i32
    %c8_i32_226 = arith.constant 8 : i32
    %507 = arith.muli %506, %c8_i32_226 : i32
    %c6_i32_227 = arith.constant 6 : i32
    %508 = arith.addi %507, %c6_i32_227 : i32
    %509 = arith.index_cast %508 : i32 to index
    %510 = memref.load %arg1[%509] : memref<64xi32, #tpu.memory_space<smem>>
    %511 = arith.index_cast %510 : i32 to index
    %c0_228 = arith.constant 0 : index
    %512 = vector.load %arg4[%511, %c0_228] : memref<32x128xf32, #tpu.memory_space<vmem>>, vector<1x128xf32>
    %513 = arith.addf %504, %512 : vector<1x128xf32>
    %c8_i32_229 = arith.constant 8 : i32
    %514 = arith.muli %arg0, %c8_i32_229 : i32
    %515 = arith.addi %514, %c6_i32_199 : i32
    %c8_i32_230 = arith.constant 8 : i32
    %516 = arith.muli %515, %c8_i32_230 : i32
    %c7_i32_231 = arith.constant 7 : i32
    %517 = arith.addi %516, %c7_i32_231 : i32
    %518 = arith.index_cast %517 : i32 to index
    %519 = memref.load %arg1[%518] : memref<64xi32, #tpu.memory_space<smem>>
    %520 = arith.index_cast %519 : i32 to index
    %c0_232 = arith.constant 0 : index
    %521 = vector.load %arg4[%520, %c0_232] : memref<32x128xf32, #tpu.memory_space<vmem>>, vector<1x128xf32>
    %522 = arith.addf %513, %521 : vector<1x128xf32>
    %523 = arith.index_cast %c6_i32_199 : i32 to index
    %c0_233 = arith.constant 0 : index
    %524 = vector.load %arg6[%523, %c0_233] : memref<8x128xf32, #tpu.memory_space<vmem>>, vector<1x128xf32>
    tpu.vector_store %arg6[%523, %c0_233], %522 {strides = array<i32>} : memref<8x128xf32, #tpu.memory_space<vmem>>, vector<1x128xf32>,
    %c7_i32_234 = arith.constant 7 : i32
    %cst_235 = arith.constant 0.000000e+00 : f32
    %525 = vector.broadcast %cst_235 : f32 to vector<1x128xf32>
    %c8_i32_236 = arith.constant 8 : i32
    %526 = arith.muli %arg0, %c8_i32_236 : i32
    %527 = arith.addi %526, %c7_i32_234 : i32
    %c8_i32_237 = arith.constant 8 : i32
    %528 = arith.muli %527, %c8_i32_237 : i32
    %c0_i32_238 = arith.constant 0 : i32
    %529 = arith.addi %528, %c0_i32_238 : i32
    %530 = arith.index_cast %529 : i32 to index
    %531 = memref.load %arg1[%530] : memref<64xi32, #tpu.memory_space<smem>>
    %532 = arith.index_cast %531 : i32 to index
    %c0_239 = arith.constant 0 : index
    %533 = vector.load %arg4[%532, %c0_239] : memref<32x128xf32, #tpu.memory_space<vmem>>, vector<1x128xf32>
    %534 = arith.addf %525, %533 : vector<1x128xf32>
    %c8_i32_240 = arith.constant 8 : i32
    %535 = arith.muli %arg0, %c8_i32_240 : i32
    %536 = arith.addi %535, %c7_i32_234 : i32
    %c8_i32_241 = arith.constant 8 : i32
    %537 = arith.muli %536, %c8_i32_241 : i32
    %c1_i32_242 = arith.constant 1 : i32
    %538 = arith.addi %537, %c1_i32_242 : i32
    %539 = arith.index_cast %538 : i32 to index
    %540 = memref.load %arg1[%539] : memref<64xi32, #tpu.memory_space<smem>>
    %541 = arith.index_cast %540 : i32 to index
    %c0_243 = arith.constant 0 : index
    %542 = vector.load %arg4[%541, %c0_243] : memref<32x128xf32, #tpu.memory_space<vmem>>, vector<1x128xf32>
    %543 = arith.addf %534, %542 : vector<1x128xf32>
    %c8_i32_244 = arith.constant 8 : i32
    %544 = arith.muli %arg0, %c8_i32_244 : i32
    %545 = arith.addi %544, %c7_i32_234 : i32
    %c8_i32_245 = arith.constant 8 : i32
    %546 = arith.muli %545, %c8_i32_245 : i32
    %c2_i32_246 = arith.constant 2 : i32
    %547 = arith.addi %546, %c2_i32_246 : i32
    %548 = arith.index_cast %547 : i32 to index
    %549 = memref.load %arg1[%548] : memref<64xi32, #tpu.memory_space<smem>>
    %550 = arith.index_cast %549 : i32 to index
    %c0_247 = arith.constant 0 : index
    %551 = vector.load %arg4[%550, %c0_247] : memref<32x128xf32, #tpu.memory_space<vmem>>, vector<1x128xf32>
    %552 = arith.addf %543, %551 : vector<1x128xf32>
    %c8_i32_248 = arith.constant 8 : i32
    %553 = arith.muli %arg0, %c8_i32_248 : i32
    %554 = arith.addi %553, %c7_i32_234 : i32
    %c8_i32_249 = arith.constant 8 : i32
    %555 = arith.muli %554, %c8_i32_249 : i32
    %c3_i32_250 = arith.constant 3 : i32
    %556 = arith.addi %555, %c3_i32_250 : i32
    %557 = arith.index_cast %556 : i32 to index
    %558 = memref.load %arg1[%557] : memref<64xi32, #tpu.memory_space<smem>>
    %559 = arith.index_cast %558 : i32 to index
    %c0_251 = arith.constant 0 : index
    %560 = vector.load %arg4[%559, %c0_251] : memref<32x128xf32, #tpu.memory_space<vmem>>, vector<1x128xf32>
    %561 = arith.addf %552, %560 : vector<1x128xf32>
    %c8_i32_252 = arith.constant 8 : i32
    %562 = arith.muli %arg0, %c8_i32_252 : i32
    %563 = arith.addi %562, %c7_i32_234 : i32
    %c8_i32_253 = arith.constant 8 : i32
    %564 = arith.muli %563, %c8_i32_253 : i32
    %c4_i32_254 = arith.constant 4 : i32
    %565 = arith.addi %564, %c4_i32_254 : i32
    %566 = arith.index_cast %565 : i32 to index
    %567 = memref.load %arg1[%566] : memref<64xi32, #tpu.memory_space<smem>>
    %568 = arith.index_cast %567 : i32 to index
    %c0_255 = arith.constant 0 : index
    %569 = vector.load %arg4[%568, %c0_255] : memref<32x128xf32, #tpu.memory_space<vmem>>, vector<1x128xf32>
    %570 = arith.addf %561, %569 : vector<1x128xf32>
    %c8_i32_256 = arith.constant 8 : i32
    %571 = arith.muli %arg0, %c8_i32_256 : i32
    %572 = arith.addi %571, %c7_i32_234 : i32
    %c8_i32_257 = arith.constant 8 : i32
    %573 = arith.muli %572, %c8_i32_257 : i32
    %c5_i32_258 = arith.constant 5 : i32
    %574 = arith.addi %573, %c5_i32_258 : i32
    %575 = arith.index_cast %574 : i32 to index
    %576 = memref.load %arg1[%575] : memref<64xi32, #tpu.memory_space<smem>>
    %577 = arith.index_cast %576 : i32 to index
    %c0_259 = arith.constant 0 : index
    %578 = vector.load %arg4[%577, %c0_259] : memref<32x128xf32, #tpu.memory_space<vmem>>, vector<1x128xf32>
    %579 = arith.addf %570, %578 : vector<1x128xf32>
    %c8_i32_260 = arith.constant 8 : i32
    %580 = arith.muli %arg0, %c8_i32_260 : i32
    %581 = arith.addi %580, %c7_i32_234 : i32
    %c8_i32_261 = arith.constant 8 : i32
    %582 = arith.muli %581, %c8_i32_261 : i32
    %c6_i32_262 = arith.constant 6 : i32
    %583 = arith.addi %582, %c6_i32_262 : i32
    %584 = arith.index_cast %583 : i32 to index
    %585 = memref.load %arg1[%584] : memref<64xi32, #tpu.memory_space<smem>>
    %586 = arith.index_cast %585 : i32 to index
    %c0_263 = arith.constant 0 : index
    %587 = vector.load %arg4[%586, %c0_263] : memref<32x128xf32, #tpu.memory_space<vmem>>, vector<1x128xf32>
    %588 = arith.addf %579, %587 : vector<1x128xf32>
    %c8_i32_264 = arith.constant 8 : i32
    %589 = arith.muli %arg0, %c8_i32_264 : i32
    %590 = arith.addi %589, %c7_i32_234 : i32
    %c8_i32_265 = arith.constant 8 : i32
    %591 = arith.muli %590, %c8_i32_265 : i32
    %c7_i32_266 = arith.constant 7 : i32
    %592 = arith.addi %591, %c7_i32_266 : i32
    %593 = arith.index_cast %592 : i32 to index
    %594 = memref.load %arg1[%593] : memref<64xi32, #tpu.memory_space<smem>>
    %595 = arith.index_cast %594 : i32 to index
    %c0_267 = arith.constant 0 : index
    %596 = vector.load %arg4[%595, %c0_267] : memref<32x128xf32, #tpu.memory_space<vmem>>, vector<1x128xf32>
    %597 = arith.addf %588, %596 : vector<1x128xf32>
    %598 = arith.index_cast %c7_i32_234 : i32 to index
    %c0_268 = arith.constant 0 : index
    %599 = vector.load %arg6[%598, %c0_268] : memref<8x128xf32, #tpu.memory_space<vmem>>, vector<1x128xf32>
    tpu.vector_store %arg6[%598, %c0_268], %597 {strides = array<i32>} : memref<8x128xf32, #tpu.memory_space<vmem>>, vector<1x128xf32>,
    %c8_i32_269 = arith.constant 8 : i32
    %c0_270 = arith.constant 0 : index
    %c0_271 = arith.constant 0 : index
    %600 = vector.load %arg6[%c0_270, %c0_271] : memref<8x128xf32, #tpu.memory_space<vmem>>, vector<8x128xf32>
    %c0_272 = arith.constant 0 : index
    %c0_273 = arith.constant 0 : index
    %601 = vector.load %arg2[%c0_272, %c0_273] : memref<1x128xf32, #tpu.memory_space<vmem>>, vector<1x128xf32>
    %602 = vector.broadcast %601 : vector<1x128xf32> to vector<8x128xf32>
    %603 = arith.mulf %600, %602 : vector<8x128xf32>
    %cst_274 = arith.constant dense<0.000000e+00> : vector<8xf32>
    %604 = vector.multi_reduction <add>, %603, %cst_274 [1] : vector<8x128xf32> to vector<8xf32>
    %605 = vector.shape_cast %604 : vector<8xf32> to vector<8x1xf32>
    %c0_275 = arith.constant 0 : index
    %c0_276 = arith.constant 0 : index
    %606 = memref.load %arg3[%c0_275, %c0_276] : memref<1x1xf32, #tpu.memory_space<smem>>
    %607 = vector.broadcast %606 : f32 to vector<8x1xf32>
    %608 = arith.addf %605, %607 : vector<8x1xf32>
    %609 = arith.negf %608 : vector<8x1xf32>
    %610 = math.exp %609 : vector<8x1xf32>
    %cst_277 = arith.constant 1.000000e+00 : f32
    %611 = vector.broadcast %cst_277 : f32 to vector<8x1xf32>
    %612 = arith.addf %611, %610 : vector<8x1xf32>
    %613 = arith.divf %611, %612 : vector<8x1xf32>
    %614 = vector.shape_cast %613 : vector<8x1xf32> to vector<8x1xf32>
    %615 = vector.broadcast %614 : vector<8x1xf32> to vector<8x128xf32>
    %c0_278 = arith.constant 0 : index
    %c0_279 = arith.constant 0 : index
    %616 = vector.load %arg5[%c0_278, %c0_279] : memref<8x128xf32, #tpu.memory_space<vmem>>, vector<8x128xf32>
    tpu.vector_store %arg5[%c0_278, %c0_279], %615 {strides = array<i32>} : memref<8x128xf32, #tpu.memory_space<vmem>>, vector<8x128xf32>,
    return
  }
  func.func @transform_0(%arg0: i32, %arg1: memref<64xi32, #tpu.memory_space<smem>>) -> (i32, i32) {
    %c0_i32 = arith.constant 0 : i32
    %c0_i32_0 = arith.constant 0 : i32
    %c0_i32_1 = arith.constant 0 : i32
    return %c0_i32, %c0_i32_0 : i32, i32
  }
  func.func @transform_1(%arg0: i32, %arg1: memref<64xi32, #tpu.memory_space<smem>>) -> (i32, i32) {
    %c0_i32 = arith.constant 0 : i32
    %c0_i32_0 = arith.constant 0 : i32
    %c0_i32_1 = arith.constant 0 : i32
    return %c0_i32, %c0_i32_0 : i32, i32
  }
  func.func @transform_2(%arg0: i32, %arg1: memref<64xi32, #tpu.memory_space<smem>>) -> (i32, i32) {
    %c0_i32 = arith.constant 0 : i32
    %c0_i32_0 = arith.constant 0 : i32
    %c0_i32_1 = arith.constant 0 : i32
    return %c0_i32, %c0_i32_0 : i32, i32
  }
  func.func @transform_3(%arg0: i32, %arg1: memref<64xi32, #tpu.memory_space<smem>>) -> (i32, i32) {
    %c0_i32 = arith.constant 0 : i32
    %c0_i32_0 = arith.constant 0 : i32
    return %arg0, %c0_i32 : i32, i32
  }
}

</mosaic_0001>

<bundles_post_ra>
// kernel: tpu_custom_call.1
= control target key start
LH: loop header
LB: loop body
LE: loop exit
PB: predicated region body
PF: predicated region fallthrough
CT: control target
= control target key end

     0   :  { %s750_s0 = inlined_call_operand.vmem [shape: s32[64], index: 0, kind: input, shape index: {}]   ;;  %s751_s1 = inlined_call_operand.vmem [shape: f32[1,128], index: 1, kind: input, shape index: {}]   ;;  %s752_s2 = inlined_call_operand.<no memory space> [shape: f32[1,1], index: 2, kind: input, shape index: {}]   ;;  %s753_s3 = inlined_call_operand.hbm [shape: f32[32,128], index: 3, kind: input, shape index: {}]   ;;  %s754_s4 = inlined_call_operand.hbm [shape: f32[8,128], index: 4, kind: output, shape index: {}]  }
   0x1   :  { %s9_s17 = sshll.u32 %s750_s0, 4  ;;  %s10_s17 = int_to_ptr.vmem [resolvable:$true] %s9_s17 }
   0x2   :  { %s547_s18 = scalar_lea.vmem %s10_s17, 16  ;;  %p552_p1 = scmp.lt.s32.totalorder %s10_s17, %s10_s17 }
   0x3   :  { %p548_p0 = scmp.ne.s32.totalorder %s10_s17, %s547_s18  ;;  %p553_p2 = scmp.lt.s32.totalorder %s547_s18, %s547_s18 }
   0x5   :  { %p554_p3 = por %p553_p2, %p552_p1 }
   0x7   :  { %p555_p4 = pnand %p554_p3, %p548_p0 }
   0x9   :  { %558 = shalt.err (!%p555_p4)  }
   0xa   :  { %s609_s19 = smov [#allocation4]  }
   0xb   :  { %12 = dma.vmem_to_smem %s10_s17, 16, %s609_s19, [#allocation3] }
   0xc   :  { %603 = dma.done.wait [#allocation3], 16 }
   0xd   :  { %604 = vsyncadd [#allocation3], 4294967280 }
   0xe   :  { %15 = sfence }
   0xf   :  { %16 = vsyncpa [#allocation7], 0 }
  0x10   :  { %17 = vsyncpa [#allocation8], 0  ;;  %s610_s20 = smov [#allocation6]   ;;  %s559_s23 = scalar_lea.hbm %s753_s3, 512 }
  0x11   :  { %s27_s21 = sshll.u32 %s610_s20, 4  ;;  %p560_p5 = scmp.ne.s32.totalorder %s753_s3, %s559_s23  ;;  %s28_s21 = int_to_ptr.vmem [resolvable:$true] %s27_s21 }
  0x12   :  { %p563_p6 = scmp.lt.u32.totalorder %s559_s23, %s753_s3 }
  0x14   :  { %p565_p7 = pnand %p563_p6, %p560_p5 }
  0x16   :  { %568 = shalt.err (!%p565_p7)
}
  0x17   :  { %s569_s28 = scalar_lea.vmem %s28_s21, 512  ;;  %p574_p9 = scmp.lt.s32.totalorder %s28_s21, %s28_s21 }
  0x18   :  { %p570_p8 = scmp.ne.s32.totalorder %s28_s21, %s569_s28  ;;  %p575_p10 = scmp.lt.s32.totalorder %s569_s28, %s569_s28 }
  0x1a   :  { %p576_p11 = por %p575_p10, %p574_p9 }
  0x1c   :  { %p577_p12 = pnand %p576_p11, %p570_p8 }
  0x1e   :  { %580 = shalt.err (!%p577_p12)
}
  0x1f   :  { %s611_s29 = smov 128   ;;  %s612_s30 = smov 8  }
  0x20   :  { %33 = dma.hbm_to_vmem [thread:$0]  %s753_s3, 512, %s28_s21, [#allocation7], %s611_s29, %s611_s29, %s612_s30  }
  0x21   :  { %605 = dma.done.wait [#allocation7], 512  }
  0x22   :  { %606 = vsyncadd [#allocation7], 4294966784  ;;  %s38_s7 = sld [smem:[#allocation4]]  ;;  %s473_s8 = sld [smem:[#allocation4 + $0x1]] }
  0x23   :  { %s474_s9 = sld [smem:[#allocation4 + $0x2]]  ;;  %s475_s10 = sld [smem:[#allocation4 + $0x3]] }
  0x24   :  { %s476_s11 = sld [smem:[#allocation4 + $0x4]]  ;;  %s477_s12 = sld [smem:[#allocation4 + $0x5]] }
  0x25   :  { %s654_s13 = sld [smem:[#allocation4 + $0x6]]  ;;  %s656_s14 = sld [smem:[#allocation4 + $0x7]] }
  0x26   :  { %s480_s15 = sld [smem:[#allocation4 + $0x8]]  ;;  %s481_s16 = sld [smem:[#allocation4 + $0x9]] }
  0x27   :  { %s482_s17 = sld [smem:[#allocation4 + $0xa]]  ;;  %s483_s18 = sld [smem:[#allocation4 + $0xb]] }
  0x28   :  { %s39_s19 = scalar_lea.vmem [#allocation6], %s38_s7  ;;  %s44_s20 = scalar_lea.vmem [#allocation6], %s473_s8 }
  0x29   :  { %v40_v0 = vld [vmem:[%s39_s19] sm:$0x1]  ;;  %s49_s3 = scalar_lea.vmem [#allocation6], %s474_s9  ;;  %s54_s21 = scalar_lea.vmem [#allocation6], %s475_s10 }
  0x2a   :  { %v45_v1 = vld [vmem:[%s44_s20] sm:$0x1]  ;;  %s59_s22 = scalar_lea.vmem [#allocation6], %s476_s11  ;;  %s64_s0 = scalar_lea.vmem [#allocation6], %s477_s12 }
  0x2b   :  { %v46_v2 = vadd.f32 %v45_v1, %v40_v0  ;;  %v50_v3 = vld [vmem:[%s49_s3] sm:$0x1]  ;;  %s484_s26 = sld [smem:[#allocation4 + $0xc]]  ;;  %s485_s28 = sld [smem:[#allocation4 + $0xd]] }
  0x2c   :  { %v55_v4 = vld [vmem:[%s54_s21] sm:$0x1]  ;;  %s82_s23 = scalar_lea.vmem [#allocation6], %s480_s15  ;;  %s87_s24 = scalar_lea.vmem [#allocation6], %s481_s16 }
  0x2d   :  { %v51_v5 = vadd.f32 %v50_v3, %v46_v2  ;;  %v60_v6 = vld [vmem:[%s59_s22] sm:$0x1]  ;;  %s92_s25 = scalar_lea.vmem [#allocation6], %s482_s17  ;;  %s97_s27 = scalar_lea.vmem [#allocation6], %s483_s18 }
  0x2e   :  { %v65_v7 = vld [vmem:[%s64_s0] sm:$0x1]  ;;  %s486_s29 = sld [smem:[#allocation4 + $0xe]]  ;;  %s658_s30 = sld [smem:[#allocation4 + $0xf]] }
  0x2f   :  { %v83_v8 = vld [vmem:[%s82_s23] sm:$0x1]  ;;  %v56_v10 = vadd.f32 %v55_v4, %v51_v5  ;;  %s488_s5 = sld [smem:[#allocation4 + $0x10]]  ;;  %s69_s6 = scalar_lea.vmem [#allocation6], %s654_s13 }
  0x30   :  { %v88_v9 = vld [vmem:[%s87_s24] sm:$0x1]  ;;  %s489_s7 = sld [smem:[#allocation4 + $0x11]]  ;;  %s490_s8 = sld [smem:[#allocation4 + $0x12]] }
  0x31   :  { %v89_v11 = vadd.f32 %v88_v9, %v83_v8  ;;  %v93_v12 = vld [vmem:[%s92_s25] sm:$0x1]  ;;  %v61_v14 = vadd.f32 %v60_v6, %v56_v10  ;;  %s661_s9 = sld [smem:[#allocation4 + $0x13]]  ;;  %s663_s10 = sld [smem:[#allocation4 + $0x14]] }
  0x32   :  { %v98_v13 = vld [vmem:[%s97_s27] sm:$0x1]  ;;  %s74_s11 = scalar_lea.vmem [#allocation6], %s656_s14  ;;  %s666_s12 = sld [smem:[#allocation4 + $0x15]] }
  0x33   :  { %v94_v15 = vadd.f32 %v93_v12, %v89_v11  ;;  %v70_v16 = vld [vmem:[%s69_s6] sm:$0x1]  ;;  %v66_v17 = vadd.f32 %v65_v7, %v61_v14  ;;  %s668_s15 = sld [smem:[#allocation4 + $0x16]]  ;;  %s670_s16 = sld [smem:[#allocation4 + $0x17]] }
  0x34   :  { %v75_v19 = vld [vmem:[%s74_s11] sm:$0x1]  ;;  %s102_s17 = scalar_lea.vmem [#allocation6], %s484_s26  ;;  %s107_s13 = scalar_lea.vmem [#allocation6], %s485_s28 }
  0x35   :  { %v99_v18 = vadd.f32 %v98_v13, %v94_v15  ;;  %v71_v20 = vadd.f32 %v70_v16, %v66_v17  ;;  %v103_v21 = vld [vmem:[%s102_s17] sm:$0x1]  ;;  %s112_s18 = scalar_lea.vmem [#allocation6], %s486_s29  ;;  %s124_s19 = scalar_lea.vmem [#allocation6], %s488_s5 }
  0x36   :  { %v108_v24 = vld [vmem:[%s107_s13] sm:$0x1]  ;;  %s129_s14 = scalar_lea.vmem [#allocation6], %s489_s7  ;;  %s134_s20 = scalar_lea.vmem [#allocation6], %s490_s8 }
  0x37   :  { %v76_v22 = vadd.f32 %v75_v19, %v71_v20  ;;  %v104_v23 = vadd.f32 %v103_v21, %v99_v18  ;;  %v113_v25 = vld [vmem:[%s112_s18] sm:$0x1]  ;;  %s117_s3 = scalar_lea.vmem [#allocation6], %s658_s30  ;;  %s139_s21 = scalar_lea.vmem [#allocation6], %s661_s9 }
  0x38   :  { %v125_v26 = vld [vmem:[%s124_s19] sm:$0x1]  ;;  %s496_s22 = sld [smem:[#allocation4 + $0x18]]  ;;  %s497_s0 = sld [smem:[#allocation4 + $0x19]] }
  0x39   :  { %77 = vst [vmem:[#allocation2] sm:$0x1] %v76_v22  ;;  %v109_v27 = vadd.f32 %v108_v24, %v104_v23  ;;  %v130_v28 = vld [vmem:[%s129_s14] sm:$0x1]  ;;  %s144_s23 = scalar_lea.vmem [#allocation6], %s663_s10  ;;  %s498_s24 = sld [smem:[#allocation4 + $0x1a]] }
  0x3a   :  { %v135_v29 = vld [vmem:[%s134_s20] sm:$0x1]  ;;  %v131_v31 = vadd.f32 %v130_v28, %v125_v26  ;;  %s499_s25 = sld [smem:[#allocation4 + $0x1b]]  ;;  %s675_s26 = sld [smem:[#allocation4 + $0x1c]] }
  0x3b   :  { %v118_v30 = vld [vmem:[%s117_s3] sm:$0x1]  ;;  %v114_v32 = vadd.f32 %v113_v25, %v109_v27  ;;  %s677_s27 = sld [smem:[#allocation4 + $0x1d]]  ;;  %s149_s28 = scalar_lea.vmem [#allocation6], %s666_s12 }
  0x3c   :  { %v140_v33 = vld [vmem:[%s139_s21] sm:$0x1]  ;;  %v136_v34 = vadd.f32 %v135_v29, %v131_v31  ;;  %s680_s29 = sld [smem:[#allocation4 + $0x1e]]  ;;  %s682_s30 = sld [smem:[#allocation4 + $0x1f]] }
  0x3d   :  { %v119_v35 = vadd.f32 %v118_v30, %v114_v32  ;;  %v145_v36 = vld [vmem:[%s144_s23] sm:$0x1]  ;;  %s504_s5 = sld [smem:[#allocation4 + $0x20]]  ;;  %s505_s6 = sld [smem:[#allocation4 + $0x21]] }
  0x3e   :  { %v141_v37 = vadd.f32 %v140_v33, %v136_v34  ;;  %v150_v38 = vld [vmem:[%s149_s28] sm:$0x1]  ;;  %s154_s7 = scalar_lea.vmem [#allocation6], %s668_s15  ;;  %s685_s8 = sld [smem:[#allocation4 + $0x22]] }
  0x3f   :  { %120 = vst [vmem:[#allocation2 + $0x1] sm:$0x1] %v119_v35  ;;  %v155_v40 = vld [vmem:[%s154_s7] sm:$0x1]  ;;  %s687_s9 = sld [smem:[#allocation4 + $0x23]]  ;;  %s159_s10 = scalar_lea.vmem [#allocation6], %s670_s16 }
  0x40   :  { %v146_v39 = vadd.f32 %v145_v36, %v141_v37  ;;  %v160_v42 = vld [vmem:[%s159_s10] sm:$0x1]  ;;  %s166_s11 = scalar_lea.vmem [#allocation6], %s496_s22  ;;  %s171_s12 = scalar_lea.vmem [#allocation6], %s497_s0 }
  0x41   :  { %v167_v43 = vld [vmem:[%s166_s11] sm:$0x1]  ;;  %s176_s17 = scalar_lea.vmem [#allocation6], %s498_s24  ;;  %s181_s15 = scalar_lea.vmem [#allocation6], %s499_s25 }
  0x42   :  { %v151_v41 = vadd.f32 %v150_v38, %v146_v39  ;;  %v172_v44 = vld [vmem:[%s171_s12] sm:$0x1]  ;;  %s186_s13 = scalar_lea.vmem [#allocation6], %s675_s26  ;;  %s191_s18 = scalar_lea.vmem [#allocation6], %s677_s27 }
  0x43   :  { %v173_v46 = vadd.f32 %v172_v44, %v167_v43  ;;  %v177_v47 = vld [vmem:[%s176_s17] sm:$0x1]  ;;  %s208_s16 = scalar_lea.vmem [#allocation6], %s504_s5  ;;  %s213_s19 = scalar_lea.vmem [#allocation6], %s505_s6 }
  0x44   :  { %v156_v45 = vadd.f32 %v155_v40, %v151_v41  ;;  %v182_v48 = vld [vmem:[%s181_s15] sm:$0x1]  ;;  %s218_s14 = scalar_lea.vmem [#allocation6], %s685_s8  ;;  %s508_s20 = sld [smem:[#allocation4 + $0x24]] }
  0x45   :  { %v178_v50 = vadd.f32 %v177_v47, %v173_v46  ;;  %v187_v51 = vld [vmem:[%s186_s13] sm:$0x1]  ;;  %s223_s3 = scalar_lea.vmem [#allocation6], %s687_s9  ;;  %s509_s21 = sld [smem:[#allocation4 + $0x25]] }
  0x46   :  { %v161_v49 = vadd.f32 %v160_v42, %v156_v45  ;;  %v192_v52 = vld [vmem:[%s191_s18] sm:$0x1]  ;;  %s510_s22 = sld [smem:[#allocation4 + $0x26]]  ;;  %s694_s0 = sld [smem:[#allocation4 + $0x27]] }
  0x47   :  { %v209_v53 = vld [vmem:[%s208_s16] sm:$0x1]  ;;  %v183_v55 = vadd.f32 %v182_v48, %v178_v50  ;;  %s512_s23 = sld [smem:[#allocation4 + $0x28]]  ;;  %s196_s24 = scalar_lea.vmem [#allocation6], %s680_s29 }
  0x48   :  { %v214_v54 = vld [vmem:[%s213_s19] sm:$0x1]  ;;  %162 = vst [vmem:[#allocation2 + $0x2] sm:$0x1] %v161_v49  ;;  %s513_s25 = sld [smem:[#allocation4 + $0x29]]  ;;  %s514_s26 = sld [smem:[#allocation4 + $0x2a]] }
  0x49   :  { %v215_v56 = vadd.f32 %v214_v54, %v209_v53  ;;  %v219_v57 = vld [vmem:[%s218_s14] sm:$0x1]  ;;  %v188_v59 = vadd.f32 %v187_v51, %v183_v55  ;;  %s697_s27 = sld [smem:[#allocation4 + $0x2b]]  ;;  %s699_s28 = sld [smem:[#allocation4 + $0x2c]] }
  0x4a   :  { %v224_v58 = vld [vmem:[%s223_s3] sm:$0x1]  ;;  %s201_s5 = scalar_lea.vmem [#allocation6], %s682_s30  ;;  %s702_s6 = sld [smem:[#allocation4 + $0x2d]] }
  0x4b   :  { %v220_v60 = vadd.f32 %v219_v57, %v215_v56  ;;  %v197_v61 = vld [vmem:[%s196_s24] sm:$0x1]  ;;  %v193_v62 = vadd.f32 %v192_v52, %v188_v59  ;;  %s704_s7 = sld [smem:[#allocation4 + $0x2e]]  ;;  %s706_s8 = sld [smem:[#allocation4 + $0x2f]]  ;;  %v385_v59 = vstv %s752_s2 }
  0x4c   :  { %v202_v0 = vld [vmem:[%s201_s5] sm:$0x1]  ;;  %s228_s9 = scalar_lea.vmem [#allocation6], %s508_s20  ;;  %s233_s29 = scalar_lea.vmem [#allocation6], %s509_s21 }
  0x4d   :  { %v225_v63 = vadd.f32 %v224_v58, %v220_v60  ;;  %v198_v1 = vadd.f32 %v197_v61, %v193_v62  ;;  %v229_v2 = vld [vmem:[%s228_s9] sm:$0x1]  ;;  %s238_s10 = scalar_lea.vmem [#allocation6], %s510_s22  ;;  %s250_s11 = scalar_lea.vmem [#allocation6], %s512_s23 }
  0x4e   :  { %v234_v5 = vld [vmem:[%s233_s29] sm:$0x1]  ;;  %s255_s30 = scalar_lea.vmem [#allocation6], %s513_s25  ;;  %s260_s12 = scalar_lea.vmem [#allocation6], %s514_s26 }
  0x4f   :  { %v203_v3 = vadd.f32 %v202_v0, %v198_v1  ;;  %v230_v4 = vadd.f32 %v229_v2, %v225_v63  ;;  %v239_v6 = vld [vmem:[%s238_s10] sm:$0x1]  ;;  %s243_s17 = scalar_lea.vmem [#allocation6], %s694_s0  ;;  %s265_s15 = scalar_lea.vmem [#allocation6], %s697_s27 }
  0x50   :  { %v251_v7 = vld [vmem:[%s250_s11] sm:$0x1]  ;;  %s520_s13 = sld [smem:[#allocation4 + $0x30]]  ;;  %s521_s18 = sld [smem:[#allocation4 + $0x31]] }
  0x51   :  { %204 = vst [vmem:[#allocation2 + $0x3] sm:$0x1] %v203_v3  ;;  %v235_v8 = vadd.f32 %v234_v5, %v230_v4  ;;  %v256_v9 = vld [vmem:[%s255_s30] sm:$0x1]  ;;  %s270_s16 = scalar_lea.vmem [#allocation6], %s699_s28  ;;  %s522_s19 = sld [smem:[#allocation4 + $0x32]] }
  0x52   :  { %v261_v10 = vld [vmem:[%s260_s12] sm:$0x1]  ;;  %v257_v12 = vadd.f32 %v256_v9, %v251_v7  ;;  %s523_s14 = sld [smem:[#allocation4 + $0x33]]  ;;  %s711_s20 = sld [smem:[#allocation4 + $0x34]] }
  0x53   :  { %v244_v11 = vld [vmem:[%s243_s17] sm:$0x1]  ;;  %v240_v13 = vadd.f32 %v239_v6, %v235_v8  ;;  %s713_s3 = sld [smem:[#allocation4 + $0x35]]  ;;  %s275_s21 = scalar_lea.vmem [#allocation6], %s702_s6 }
  0x54   :  { %v266_v14 = vld [vmem:[%s265_s15] sm:$0x1]  ;;  %v262_v15 = vadd.f32 %v261_v10, %v257_v12  ;;  %s716_s22 = sld [smem:[#allocation4 + $0x36]]  ;;  %s718_s0 = sld [smem:[#allocation4 + $0x37]] }
  0x55   :  { %v245_v16 = vadd.f32 %v244_v11, %v240_v13  ;;  %v271_v17 = vld [vmem:[%s270_s16] sm:$0x1]  ;;  %s528_s23 = sld [smem:[#allocation4 + $0x38]]  ;;  %s529_s24 = sld [smem:[#allocation4 + $0x39]] }
  0x56   :  { %v267_v18 = vadd.f32 %v266_v14, %v262_v15  ;;  %v276_v19 = vld [vmem:[%s275_s21] sm:$0x1]  ;;  %s280_s25 = scalar_lea.vmem [#allocation6], %s704_s7  ;;  %s721_s26 = sld [smem:[#allocation4 + $0x3a]] }
  0x57   :  { %246 = vst [vmem:[#allocation2 + $0x4] sm:$0x1] %v245_v16  ;;  %v281_v21 = vld [vmem:[%s280_s25] sm:$0x1]  ;;  %s723_s27 = sld [smem:[#allocation4 + $0x3b]]  ;;  %s285_s28 = scalar_lea.vmem [#allocation6], %s706_s8 }
  0x58   :  { %v272_v20 = vadd.f32 %v271_v17, %v267_v18  ;;  %v286_v23 = vld [vmem:[%s285_s28] sm:$0x1]  ;;  %s292_s5 = scalar_lea.vmem [#allocation6], %s520_s13  ;;  %s297_s6 = scalar_lea.vmem [#allocation6], %s521_s18 }
  0x59   :  { %v293_v24 = vld [vmem:[%s292_s5] sm:$0x1]  ;;  %s302_s9 = scalar_lea.vmem [#allocation6], %s522_s19  ;;  %s307_s7 = scalar_lea.vmem [#allocation6], %s523_s14 }
  0x5a   :  { %v277_v22 = vadd.f32 %v276_v19, %v272_v20  ;;  %v298_v25 = vld [vmem:[%s297_s6] sm:$0x1]  ;;  %s312_s29 = scalar_lea.vmem [#allocation6], %s711_s20  ;;  %s317_s10 = scalar_lea.vmem [#allocation6], %s713_s3 }
  0x5b   :  { %v299_v27 = vadd.f32 %v298_v25, %v293_v24  ;;  %v303_v28 = vld [vmem:[%s302_s9] sm:$0x1]  ;;  %s334_s8 = scalar_lea.vmem [#allocation6], %s528_s23  ;;  %s339_s11 = scalar_lea.vmem [#allocation6], %s529_s24 }
  0x5c   :  { %v282_v26 = vadd.f32 %v281_v21, %v277_v22  ;;  %v308_v29 = vld [vmem:[%s307_s7] sm:$0x1]  ;;  %s344_s30 = scalar_lea.vmem [#allocation6], %s721_s26  ;;  %s532_s12 = sld [smem:[#allocation4 + $0x3c]] }
  0x5d   :  { %v304_v31 = vadd.f32 %v303_v28, %v299_v27  ;;  %v313_v32 = vld [vmem:[%s312_s29] sm:$0x1]  ;;  %s349_s17 = scalar_lea.vmem [#allocation6], %s723_s27  ;;  %s533_s15 = sld [smem:[#allocation4 + $0x3d]] }
  0x5e   :  { %v287_v30 = vadd.f32 %v286_v23, %v282_v26  ;;  %v318_v33 = vld [vmem:[%s317_s10] sm:$0x1]  ;;  %s534_s13 = sld [smem:[#allocation4 + $0x3e]]  ;;  %s535_s18 = sld [smem:[#allocation4 + $0x3f]] }
  0x5f   :  { %v335_v34 = vld [vmem:[%s334_s8] sm:$0x1]  ;;  %v309_v36 = vadd.f32 %v308_v29, %v304_v31  ;;  %s322_s16 = scalar_lea.vmem [#allocation6], %s716_s22  ;;  %s327_s19 = scalar_lea.vmem [#allocation6], %s718_s0 }
  0x60   :  { %v340_v35 = vld [vmem:[%s339_s11] sm:$0x1]  ;;  %288 = vst [vmem:[#allocation2 + $0x5] sm:$0x1] %v287_v30  ;;  %s613_s25 = smov [#allocation9]  }
  0x61   :  { %v341_v37 = vadd.f32 %v340_v35, %v335_v34  ;;  %v345_v38 = vld [vmem:[%s344_s30] sm:$0x1]  ;;  %v314_v40 = vadd.f32 %v313_v32, %v309_v36  ;;  %s400_s26 = sshll.u32 %s613_s25, 4  ;;  %s401_s26 = int_to_ptr.vmem [resolvable:$true] %s400_s26 }
  0x62   :  { %v350_v39 = vld [vmem:[%s349_s17] sm:$0x1]  ;;  %s354_s14 = scalar_lea.vmem [#allocation6], %s532_s12  ;;  %p586_p0 = scmp.lt.s32.totalorder %s401_s26, %s401_s26 }
  0x63   :  { %v346_v41 = vadd.f32 %v345_v38, %v341_v37  ;;  %v323_v42 = vld [vmem:[%s322_s16] sm:$0x1]  ;;  %v319_v43 = vadd.f32 %v318_v33, %v314_v40  ;;  %s359_s20 = scalar_lea.vmem [#allocation6], %s533_s15 }
  0x64   :  { %v328_v45 = vld [vmem:[%s327_s19] sm:$0x1]  ;;  %s364_s3 = scalar_lea.vmem [#allocation6], %s534_s13  ;;  %s369_s21 = scalar_lea.vmem [#allocation6], %s535_s18 }
  0x65   :  { %v351_v44 = vadd.f32 %v350_v39, %v346_v41  ;;  %v324_v46 = vadd.f32 %v323_v42, %v319_v43  ;;  %v355_v47 = vld [vmem:[%s354_s14] sm:$0x1] }
  0x66   :  { %v360_v50 = vld [vmem:[%s359_s20] sm:$0x1] }
  0x67   :  { %v329_v48 = vadd.f32 %v328_v45, %v324_v46  ;;  %v356_v49 = vadd.f32 %v355_v47, %v351_v44  ;;  %v365_v51 = vld [vmem:[%s364_s3] sm:$0x1] }
  0x68   :  { %v370_v53 = vld [vmem:[%s369_s21] sm:$0x1] }
  0x69   :  { %330 = vst [vmem:[#allocation2 + $0x6] sm:$0x1] %v329_v48  ;;  %v361_v52 = vadd.f32 %v360_v50, %v356_v49  ;;  %v536_v56 = vld [vmem:[%s751_s1] ss:$0 sm:$0xff]  ;;  %s581_s1 = scalar_lea.vmem %s401_s26, 128 }
  0x6a   :  { %p582_p13 = scmp.ne.s32.totalorder %s401_s26, %s581_s1  ;;  %p587_p1 = scmp.lt.s32.totalorder %s581_s1, %s581_s1 }
  0x6b   :  { %v366_v54 = vadd.f32 %v365_v51, %v361_v52 }
  0x6c   :  { %p588_p2 = por %p587_p1, %p586_p0 }
  0x6d   :  { %v371_v55 = vadd.f32 %v370_v53, %v366_v54 }
  0x6e   :  { %p589_p3 = pnand %p588_p2, %p582_p13 }
  0x6f   :  { %372 = vst [vmem:[#allocation2 + $0x7] sm:$0x1] %v371_v55 }
  0x76   :  { %v373_v57 = vld [vmem:[#allocation2] sm:$0xff] }
  0x77   :  { %v381_v58 = vmul.f32 %v536_v56, %v373_v57 }
  0x79   :  { %382 = vadd.xlane.f32.xlu0 %v381_v58 }
 0x106   :  { %v383_v60 = vpop.xlane.xlu0 %382 }
 0x107   :  { %v386_v61 = vadd.f32 %v385_v59, %v383_v60 }
 0x109   :  { %v537_v62 = vmul.f32 -1.442695, %v386_v61 }
 0x10b   :  { %543 = vpow2.f32 %v537_v62 }
 0x115   :  { %v544_v63 = vpop.eup %543 }
 0x116   :  { %v390_v0 = vadd.f32 1.0, %v544_v63 }
 0x118   :  { %545 = vrcp.f32 %v390_v0 }
 0x122   :  { %v546_v1 = vpop.eup %545 }
 0x123   :  { %393 = vst [vmem:[#allocation9] sm:$0xff] %v546_v1 }
 0x124   :  { %592 = shalt.err (!%p589_p3)
}
 0x125   :  { %s593_s28 = scalar_lea.hbm %s754_s4, 128 }
 0x126   :  { %p594_p4 = scmp.ne.s32.totalorder %s754_s4, %s593_s28  ;;  %p597_p5 = scmp.lt.u32.totalorder %s593_s28, %s754_s4 }
 0x128   :  { %p599_p6 = pnand %p597_p5, %p594_p4 }
 0x12a   :  { %602 = shalt.err (!%p599_p6)
}
 0x12b   :  { %403 = dma.vmem_to_hbm [thread:$0]  %s401_s26, 128, %s754_s4, [#allocation8]  }
 0x12c   :  { %607 = dma.done.wait [#allocation8], 128  }
 0x12d   :  { %608 = vsyncadd [#allocation8], 4294967168 }
 0x12e   :  { %407 = vsyncpa [#allocation7], 1 }
 0x12f   :  { %408 = vsyncpa [#allocation8], 1 }

</bundles_post_ra>
